<compile_context>
chip_gen: v6e
topology: v6e:2x2x1
jax: 0.10.0
libtpu: 0.0.40
codegen_flags: <defaults>
</compile_context>

<pallas_src>
import jax
import jax.numpy as jnp
from jax import lax
from jax.experimental import pallas as pl
from jax.experimental.pallas import tpu as pltpu


def _largest_divisor(n, cap):
    """Largest divisor of n that is <= cap (>= 1)."""
    cap = max(1, min(n, cap)) if n > 0 else 1
    for d in range(cap, 0, -1):
        if n % d == 0:
            return d
    return 1


def _conv_rows(band, w2d, KH, KW, Wo, Cin, stride, rows):
    """Conv of `rows` output rows from a contiguous input row band (a VALUE).

    Builds the im2col patch (rows*Wo, KH*KW*Cin) by lane-concatenating the
    KH*KW shifted windows and performs a single MXU matmul against the
    pre-reshaped (KH*KW*Cin, Cout) weight slab.
    """
    parts = []
    for kh in range(KH):
        for kw in range(KW):
            if stride == 1:
                win = lax.slice(band, (kh, kw, 0), (kh + rows, kw + Wo, Cin))
            else:
                win = lax.slice(
                    band, (kh, kw, 0),
                    (kh + (rows - 1) * stride + 1, kw + (Wo - 1) * stride + 1, Cin),
                    (stride, stride, 1))
            parts.append(win.reshape(rows * Wo, Cin))
    patch = jnp.concatenate(parts, axis=-1)            # (rows*Wo, KH*KW*Cin)
    # TODO(synk): optionally cast patch/w2d to bf16 (f32 accumulate) for native
    # MXU rate; kept f32 here to stay well inside the test tolerance.
    return jnp.dot(patch, w2d, preferred_element_type=jnp.float32)


# ---------------- Pallas kernels ----------------

def _make_stats_kernel(KH, KW, stride, Ho, Wo, Cin, Cout, tile_rows):
    """Pass 1: per-image partial sum / sum-of-squares of the conv output.
    The conv output is produced tile-by-tile in registers and reduced
    immediately — it is never written to HBM."""
    n_chunks = Ho // tile_rows
    band_h = (tile_rows - 1) * stride + KH

    def kernel(x_ref, w_ref, sum_ref, ssq_ref):
        w2d = w_ref[...]

        def body(c, carry):
            s, q = carry
            band = x_ref[pl.ds(c * tile_rows * stride, band_h)]   # (band_h, Wp, Cin)
            y = _conv_rows(band, w2d, KH, KW, Wo, Cin, stride, tile_rows)
            s = s + jnp.sum(y, axis=0, keepdims=True)
            q = q + jnp.sum(y * y, axis=0, keepdims=True)
            return s, q

        init = (jnp.zeros((1, Cout), jnp.float32),
                jnp.zeros((1, Cout), jnp.float32))
        s, q = lax.fori_loop(0, n_chunks, body, init)
        sum_ref[...] = s
        ssq_ref[...] = q

    return kernel


def _make_fused_kernel(KH, KW, stride, Ho, Wo, Cin, Cout, tile_rows, use_pooling):
    """Pass 2: recompute conv tile-by-tile, apply BN affine + ReLU (+ 2x2 pool),
    and store the result with minor dims flattened to a lane-dense slab."""
    if use_pooling:
        Ho2, Wo2 = Ho // 2, Wo // 2          # MaxPool2d(2,2) floors odd dims
        rows = 2 * tile_rows                 # conv output rows per chunk
        n_chunks = Ho2 // tile_rows if tile_rows > 0 else 0
    else:
        rows = tile_rows
        n_chunks = Ho // tile_rows
    band_h = (rows - 1) * stride + KH

    def kernel(x_ref, w_ref, s_ref, t_ref, o_ref):
        w2d = w_ref[...]
        scale = s_ref[...]                   # (1, Cout)
        shift = t_ref[...]                   # (1, Cout)

        def body(c, carry):
            band = x_ref[pl.ds(c * rows * stride, band_h)]        # (band_h, Wp, Cin)
            y = _conv_rows(band, w2d, KH, KW, Wo, Cin, stride, rows)
            y = jnp.maximum(y * scale + shift, 0.0)               # BN affine + ReLU
            if use_pooling:
                y = y.reshape(tile_rows, 2, Wo, Cout)
                y = lax.slice(y, (0, 0, 0, 0), (tile_rows, 2, 2 * Wo2, Cout))
                y = y.reshape(tile_rows, 2, Wo2, 2, Cout)
                y = jnp.max(jnp.max(y, axis=3), axis=1)           # (tile_rows, Wo2, Cout)
                o_ref[pl.ds(c * tile_rows, tile_rows), :] = y.reshape(tile_rows, Wo2 * Cout)
            else:
                o_ref[pl.ds(c * tile_rows, tile_rows), :] = y.reshape(tile_rows, Wo * Cout)
            return carry

        lax.fori_loop(0, n_chunks, body, 0)

    return kernel


# ---------------- Wrapper ----------------

def conv_layer_forward(x_nchw, params, stride, padding, use_pooling=True, eps=1e-5):
    w_oihw = params["conv_w"].astype(jnp.float32)        # (Cout, Cin, KH, KW)
    gamma = params["bn_gamma"].astype(jnp.float32)
    beta = params["bn_beta"].astype(jnp.float32)
    # params["conv_b"] intentionally unused: with training-mode BatchNorm right
    # after the conv, the bias cancels exactly in (y - mean(y)).
    # TODO(synk): add the bias back if this layer is ever run with eval-mode
    # (running) statistics or without BN.

    N, Cin, H, W = x_nchw.shape
    Cout, _, KH, KW = w_oihw.shape

    # NHWC so channels sit on the TPU lane dim.
    # TODO(synk): keep NHWC end-to-end at the call site to drop these relayouts.
    x_nhwc = jnp.transpose(x_nchw, (0, 2, 3, 1)).astype(jnp.float32)
    # TODO(synk): fold zero-padding into the kernel (zero-init VMEM scratch +
    # interior DMA) to avoid materializing a padded copy of x in HBM.
    xp = jnp.pad(x_nhwc, ((0, 0), (padding, padding), (padding, padding), (0, 0)))
    Hp, Wp = int(xp.shape[1]), int(xp.shape[2])
    Ho = (H + 2 * padding - KH) // stride + 1
    Wo = (W + 2 * padding - KW) // stride + 1
    Kdim = KH * KW * Cin

    # (KH, KW, Cin, Cout) -> (KH*KW*Cin, Cout); row order matches the in-kernel
    # im2col lane-concatenation (kh-major, then kw, then ci).
    w2d = jnp.transpose(w_oihw, (2, 3, 1, 0)).reshape(Kdim, Cout)

    cparams = pltpu.CompilerParams(
        dimension_semantics=("parallel",),
        vmem_limit_bytes=32 * 1024 * 1024)
    # TODO(synk): for large images add an output-row grid axis with a halo DMA
    # instead of holding one whole padded image per grid step in VMEM.

    # ---- Pass 1: BatchNorm batch statistics (conv output never touches HBM) ----
    th = _largest_divisor(Ho, max(1, 512 // max(Wo, 1)))
    psum, pssq = pl.pallas_call(
        _make_stats_kernel(KH, KW, stride, Ho, Wo, Cin, Cout, th),
        out_shape=(jax.ShapeDtypeStruct((N, 1, Cout), jnp.float32),
                   jax.ShapeDtypeStruct((N, 1, Cout), jnp.float32)),
        grid=(N,),
        in_specs=[pl.BlockSpec((None, Hp, Wp, Cin), lambda n: (n, 0, 0, 0)),
                  pl.BlockSpec((Kdim, Cout), lambda n: (0, 0))],
        out_specs=(pl.BlockSpec((None, 1, Cout), lambda n: (n, 0, 0)),
                   pl.BlockSpec((None, 1, Cout), lambda n: (n, 0, 0))),
        compiler_params=cparams,
    )(xp, w2d)

    # BatchNorm2d forward in training mode: batch statistics, biased variance.
    M = N * Ho * Wo
    csum = jnp.sum(psum, axis=0)                     # (1, Cout)
    cssq = jnp.sum(pssq, axis=0)                     # (1, Cout)
    mean = csum / M
    # TODO(synk): E[y^2]-E[y]^2 can cancel catastrophically for huge activations;
    # the clamp keeps sqrt well-defined. A shifted/Welford variant would be safer.
    var = jnp.maximum(cssq / M - mean * mean, 0.0)
    inv = gamma.reshape(1, Cout) / jnp.sqrt(var + eps)
    scale = inv                                      # (1, Cout)
    shift = beta.reshape(1, Cout) - mean * inv       # (1, Cout)

    # ---- Pass 2: fused conv (recompute) + BN affine + ReLU (+ 2x2 max-pool) ----
    in_specs = [pl.BlockSpec((None, Hp, Wp, Cin), lambda n: (n, 0, 0, 0)),
                pl.BlockSpec((Kdim, Cout), lambda n: (0, 0)),
                pl.BlockSpec((1, Cout), lambda n: (0, 0)),
                pl.BlockSpec((1, Cout), lambda n: (0, 0))]

    if use_pooling:
        Ho2, Wo2 = Ho // 2, Wo // 2
        tp = _largest_divisor(Ho2, max(1, 256 // max(Wo, 1)))
        out_flat = pl.pallas_call(
            _make_fused_kernel(KH, KW, stride, Ho, Wo, Cin, Cout, tp, True),
            out_shape=jax.ShapeDtypeStruct((N, Ho2, Wo2 * Cout), jnp.float32),
            grid=(N,),
            in_specs=in_specs,
            out_specs=pl.BlockSpec((None, Ho2, Wo2 * Cout), lambda n: (n, 0, 0)),
            compiler_params=cparams,
        )(xp, w2d, scale, shift)
        out_nhwc = out_flat.reshape(N, Ho2, Wo2, Cout)
    else:
        th2 = _largest_divisor(Ho, max(1, 512 // max(Wo, 1)))
        out_flat = pl.pallas_call(
            _make_fused_kernel(KH, KW, stride, Ho, Wo, Cin, Cout, th2, False),
            out_shape=jax.ShapeDtypeStruct((N, Ho, Wo * Cout), jnp.float32),
            grid=(N,),
            in_specs=in_specs,
            out_specs=pl.BlockSpec((None, Ho, Wo * Cout), lambda n: (n, 0, 0)),
            compiler_params=cparams,
        )(xp, w2d, scale, shift)
        out_nhwc = out_flat.reshape(N, Ho, Wo, Cout)

    return jnp.transpose(out_nhwc, (0, 3, 1, 2))      # back to NCHW


# ---------------- Pure-JAX reference (for correctness check) ----------------

def _reference_forward(x, Wt, b, gamma, beta, stride, padding, use_pooling, eps=1e-5):
    y = lax.conv_general_dilated(
        x, Wt, window_strides=(stride, stride),
        padding=[(padding, padding), (padding, padding)],
        dimension_numbers=("NCHW", "OIHW", "NCHW"),
        precision=lax.Precision.HIGHEST)
    y = y + b[None, :, None, None]
    mean = y.mean(axis=(0, 2, 3), keepdims=True)
    var = y.var(axis=(0, 2, 3), keepdims=True)
    y = (y - mean) / jnp.sqrt(var + eps)
    y = y * gamma[None, :, None, None] + beta[None, :, None, None]
    y = jnp.maximum(y, 0.0)
    if use_pooling:
        N, C, H, W = y.shape
        y = y[:, :, : H // 2 * 2, : W // 2 * 2]
        y = y.reshape(N, C, H // 2, 2, W // 2, 2).max(axis=(3, 5))
    return y


if __name__ == "__main__":
    key = jax.random.PRNGKey(0)
    k_x, k_w, k_b, k_g, k_bt = jax.random.split(key, 5)

    # Conv_layer(in_channels=4, out_channels=8, kernel_size=3, stride=1, padding=1)
    N, Cin, H, W = 2, 4, 16, 16
    Cout, KH, KW, stride, padding = 8, 3, 3, 1, 1

    x = jax.random.normal(k_x, (N, Cin, H, W), dtype=jnp.float32)
    params = {
        "conv_w": 0.1 * jax.random.normal(k_w, (Cout, Cin, KH, KW), dtype=jnp.float32),
        "conv_b": 0.1 * jax.random.normal(k_b, (Cout,), dtype=jnp.float32),
        "bn_gamma": 1.0 + 0.1 * jax.random.normal(k_g, (Cout,), dtype=jnp.float32),
        "bn_beta": 0.1 * jax.random.normal(k_bt, (Cout,), dtype=jnp.float32),
    }

    for use_pooling in (True, False):
        out = conv_layer_forward(x, params, stride, padding, use_pooling)
        out = jax.block_until_ready(out)
        ref = _reference_forward(x, params["conv_w"], params["conv_b"],
                                 params["bn_gamma"], params["bn_beta"],
                                 stride, padding, use_pooling)
        assert out.shape == ref.shape, (out.shape, ref.shape)
        err = float(jnp.max(jnp.abs(out - ref)))
        assert jnp.allclose(out, ref, atol=1e-3, rtol=1e-3), err

    print("KERNEL_OK")
</pallas_src>

<mosaic_0001>
module attributes {stable_mosaic.version = 11 : i64} {
  func.func @kernel(%arg0: i32, %arg1: memref<1x18x18x4xf32, #tpu.memory_space<vmem>>, %arg2: memref<36x8xf32, #tpu.memory_space<vmem>>, %arg3: memref<1x1x8xf32, #tpu.memory_space<vmem>>, %arg4: memref<1x1x8xf32, #tpu.memory_space<vmem>>) attributes {dimension_semantics = [#tpu.dimension_semantics<parallel>], iteration_bounds = array<i64: 2>, scalar_prefetch = 0 : i64, scratch_operands = 0 : i64, tpu.core_type = #tpu.core_type<tc>, window_params = [{transform_indices = @transform_0, window_bounds = array<i64: 1, 18, 18, 4>}, {pipeline_mode = #tpu.pipeline_mode<synchronous>, transform_indices = @transform_1, window_bounds = array<i64: 36, 8>}, {transform_indices = @transform_2, window_bounds = array<i64: 1, 1, 8>}, {transform_indices = @transform_3, window_bounds = array<i64: 1, 1, 8>}]} {
    %c0 = arith.constant 0 : index
    %c0_0 = arith.constant 0 : index
    %0 = vector.load %arg2[%c0, %c0_0] : memref<36x8xf32, #tpu.memory_space<vmem>>, vector<36x8xf32>
    %cst = arith.constant 0.000000e+00 : f32
    %1 = vector.broadcast %cst : f32 to vector<1x8xf32>
    %cst_1 = arith.constant 0.000000e+00 : f32
    %2 = vector.broadcast %cst_1 : f32 to vector<1x8xf32>
    %c0_i32 = arith.constant 0 : i32
    %c16_i32 = arith.constant 16 : i32
    %3 = arith.muli %c0_i32, %c16_i32 : i32
    %c1_i32 = arith.constant 1 : i32
    %4 = arith.muli %3, %c1_i32 : i32
    %c0_2 = arith.constant 0 : index
    %5 = arith.index_cast %4 : i32 to index
    %c0_3 = arith.constant 0 : index
    %c0_4 = arith.constant 0 : index
    %6 = vector.load %arg1[%c0_2, %5, %c0_3, %c0_4] : memref<1x18x18x4xf32, #tpu.memory_space<vmem>>, vector<1x18x18x4xf32>
    %7 = vector.shape_cast %6 : vector<1x18x18x4xf32> to vector<18x18x4xf32>
    %8 = vector.extract_strided_slice %7 {offsets = [0, 0, 0], sizes = [16, 16, 4], strides = [1, 1, 1]} : vector<18x18x4xf32> to vector<16x16x4xf32>
    %9 = vector.shape_cast %8 : vector<16x16x4xf32> to vector<256x4xf32>
    %10 = vector.extract_strided_slice %7 {offsets = [0, 1, 0], sizes = [16, 16, 4], strides = [1, 1, 1]} : vector<18x18x4xf32> to vector<16x16x4xf32>
    %11 = vector.shape_cast %10 : vector<16x16x4xf32> to vector<256x4xf32>
    %12 = vector.extract_strided_slice %7 {offsets = [0, 2, 0], sizes = [16, 16, 4], strides = [1, 1, 1]} : vector<18x18x4xf32> to vector<16x16x4xf32>
    %13 = vector.shape_cast %12 : vector<16x16x4xf32> to vector<256x4xf32>
    %14 = vector.extract_strided_slice %7 {offsets = [1, 0, 0], sizes = [16, 16, 4], strides = [1, 1, 1]} : vector<18x18x4xf32> to vector<16x16x4xf32>
    %15 = vector.shape_cast %14 : vector<16x16x4xf32> to vector<256x4xf32>
    %16 = vector.extract_strided_slice %7 {offsets = [1, 1, 0], sizes = [16, 16, 4], strides = [1, 1, 1]} : vector<18x18x4xf32> to vector<16x16x4xf32>
    %17 = vector.shape_cast %16 : vector<16x16x4xf32> to vector<256x4xf32>
    %18 = vector.extract_strided_slice %7 {offsets = [1, 2, 0], sizes = [16, 16, 4], strides = [1, 1, 1]} : vector<18x18x4xf32> to vector<16x16x4xf32>
    %19 = vector.shape_cast %18 : vector<16x16x4xf32> to vector<256x4xf32>
    %20 = vector.extract_strided_slice %7 {offsets = [2, 0, 0], sizes = [16, 16, 4], strides = [1, 1, 1]} : vector<18x18x4xf32> to vector<16x16x4xf32>
    %21 = vector.shape_cast %20 : vector<16x16x4xf32> to vector<256x4xf32>
    %22 = vector.extract_strided_slice %7 {offsets = [2, 1, 0], sizes = [16, 16, 4], strides = [1, 1, 1]} : vector<18x18x4xf32> to vector<16x16x4xf32>
    %23 = vector.shape_cast %22 : vector<16x16x4xf32> to vector<256x4xf32>
    %24 = vector.extract_strided_slice %7 {offsets = [2, 2, 0], sizes = [16, 16, 4], strides = [1, 1, 1]} : vector<18x18x4xf32> to vector<16x16x4xf32>
    %25 = vector.shape_cast %24 : vector<16x16x4xf32> to vector<256x4xf32>
    %26 = tpu.concatenate %9, %11, %13, %15, %17, %19, %21, %23, %25 in 1 : vector<256x4xf32>, vector<256x4xf32>, vector<256x4xf32>, vector<256x4xf32>, vector<256x4xf32>, vector<256x4xf32>, vector<256x4xf32>, vector<256x4xf32>, vector<256x4xf32> -> vector<256x36xf32>
    %cst_5 = arith.constant dense<0.000000e+00> : vector<256x8xf32>
    %27 = tpu.matmul %26, %0, %cst_5 {dimension_numbers = #tpu.dot_dimension_numbers<[1], [0], [0], [1], [0, 0, 1, 1], [], []>} : vector<256x36xf32>, vector<36x8xf32>, vector<256x8xf32> -> vector<256x8xf32>
    %cst_6 = arith.constant dense<0.000000e+00> : vector<8xf32>
    %28 = vector.multi_reduction <add>, %27, %cst_6 [0] : vector<256x8xf32> to vector<8xf32>
    %29 = vector.shape_cast %28 : vector<8xf32> to vector<1x8xf32>
    %30 = arith.addf %1, %29 : vector<1x8xf32>
    %31 = arith.mulf %27, %27 : vector<256x8xf32>
    %cst_7 = arith.constant dense<0.000000e+00> : vector<8xf32>
    %32 = vector.multi_reduction <add>, %31, %cst_7 [0] : vector<256x8xf32> to vector<8xf32>
    %33 = vector.shape_cast %32 : vector<8xf32> to vector<1x8xf32>
    %34 = arith.addf %2, %33 : vector<1x8xf32>
    %c1_i32_8 = arith.constant 1 : i32
    %c0_9 = arith.constant 0 : index
    %c0_10 = arith.constant 0 : index
    %c0_11 = arith.constant 0 : index
    %35 = vector.load %arg3[%c0_9, %c0_10, %c0_11] : memref<1x1x8xf32, #tpu.memory_space<vmem>>, vector<1x1x8xf32>
    %36 = vector.shape_cast %35 : vector<1x1x8xf32> to vector<1x8xf32>
    %37 = vector.shape_cast %30 : vector<1x8xf32> to vector<1x1x8xf32>
    tpu.vector_store %arg3[%c0_9, %c0_10, %c0_11], %37 {strides = array<i32>} : memref<1x1x8xf32, #tpu.memory_space<vmem>>, vector<1x1x8xf32>,
    %c0_12 = arith.constant 0 : index
    %c0_13 = arith.constant 0 : index
    %c0_14 = arith.constant 0 : index
    %38 = vector.load %arg4[%c0_12, %c0_13, %c0_14] : memref<1x1x8xf32, #tpu.memory_space<vmem>>, vector<1x1x8xf32>
    %39 = vector.shape_cast %38 : vector<1x1x8xf32> to vector<1x8xf32>
    %40 = vector.shape_cast %34 : vector<1x8xf32> to vector<1x1x8xf32>
    tpu.vector_store %arg4[%c0_12, %c0_13, %c0_14], %40 {strides = array<i32>} : memref<1x1x8xf32, #tpu.memory_space<vmem>>, vector<1x1x8xf32>,
    return
  }
  func.func @transform_0(%arg0: i32) -> (i32, i32, i32, i32) {
    %c0_i32 = arith.constant 0 : i32
    %c0_i32_0 = arith.constant 0 : i32
    %c0_i32_1 = arith.constant 0 : i32
    %c0_i32_2 = arith.constant 0 : i32
    return %arg0, %c0_i32, %c0_i32_0, %c0_i32_1 : i32, i32, i32, i32
  }
  func.func @transform_1(%arg0: i32) -> (i32, i32) {
    %c0_i32 = arith.constant 0 : i32
    %c0_i32_0 = arith.constant 0 : i32
    %c0_i32_1 = arith.constant 0 : i32
    return %c0_i32, %c0_i32_0 : i32, i32
  }
  func.func @transform_2(%arg0: i32) -> (i32, i32, i32) {
    %c0_i32 = arith.constant 0 : i32
    %c0_i32_0 = arith.constant 0 : i32
    %c0_i32_1 = arith.constant 0 : i32
    return %arg0, %c0_i32, %c0_i32_0 : i32, i32, i32
  }
  func.func @transform_3(%arg0: i32) -> (i32, i32, i32) {
    %c0_i32 = arith.constant 0 : i32
    %c0_i32_0 = arith.constant 0 : i32
    %c0_i32_1 = arith.constant 0 : i32
    return %arg0, %c0_i32, %c0_i32_0 : i32, i32, i32
  }
}

</mosaic_0001>

<bundles_post_ra>
// kernel: tpu_custom_call.1
= control target key start
LH: loop header
LB: loop body
LE: loop exit
PB: predicated region body
PF: predicated region fallthrough
CT: control target
= control target key end

     0   :  { %9 = vsyncpa [#allocation3], 0  ;;  %s4229_s0 = inlined_call_operand.vmem [shape: f32[2,18,18,4], index: 0, kind: input, shape index: {}]   ;;  %s4230_s1 = inlined_call_operand.vmem [shape: f32[36,8], index: 1, kind: input, shape index: {}]   ;;  %s4231_s2 = inlined_call_operand.hbm [shape: f32[2,1,8], index: 2, kind: output, shape index: {0}]   ;;  %s4232_s3 = inlined_call_operand.hbm [shape: f32[2,1,8], index: 3, kind: output, shape index: {1}]  }
   0x1   :  { %11 = vsyncpa [#allocation3 + $0x1], 0 }
   0x2   :  { %12 = vsyncpa [#allocation5], 0 }
   0x3   :  { %14 = vsyncpa [#allocation5 + $0x1], 0  ;;  %s2471_s12 = smov 0   ;;  %s2473_s13 = smov 0  }
   0x4   :  { %s2475_s14 = smov 0   ;;  %s2477_s15 = smov 0  }
   0x5 LB: > { %s2492_s16 = sadd.s32 4294967295, %s2439_s15   ;;  %s2119_s17 = sadd.s32 4294967294, %s2439_s15   ;;  %s2439_s15 = sphi %s2477_s15, %s4492_s15   ;;  %s2435_s14 = sphi %s2475_s14, %s4491_s14   ;;  %s2431_s13 = sphi %s2473_s13, %s4490_s13   ;;  %s2427_s12 = sphi %s2471_s12, %s4489_s12  }
   0x6   : > { %s2496_s18 = sadd.s32 1, %s2439_s15   ;;  %s74_s19 = sadd.s32 1, %s2435_s14 }
   0x7   : > { %s71_s20 = ssub.s32 %s2439_s15, %s2496_s18  ;;  %p84_p0 = scmp.ne.s32.totalorder %s2435_s14, %s2431_s13 }
   0x8   : > { %p72_p1 = scmp.eq.s32.totalorder %s71_s20, 0  ;;  %p85_p2 = scmp.eq.s32.totalorder %s2492_s16, 1 }
   0x9   : > { %p90_p3 = scmp.ne.s32.totalorder %s2431_s13, %s2427_s12  ;;  %p91_p4 = scmp.eq.s32.totalorder %s2119_s17, 1 }
   0xa   : > { %s2507_s21 = scalar_select %p72_p1, %s2435_s14, %s74_s19  }
   0xb   : > { %p2509_p5 = por %p85_p2, %p84_p0  ;;  %p2513_p6 = por %p91_p4, %p90_p3 }
   0xc   : > { %p2122_p7 = scmp.ge.s32.totalorder %s2439_s15, 1  ;;  %p146_p8 = scmp.lt.s32.totalorder %s2439_s15, 3 }
   0xe   : > { %p147_p9 = pnand %p2122_p7, %p146_p8 }
  0x10   : > { %150 = sbr.rel (%p147_p9) target bundleno = 905 (0x389), region = 28 }
  0x15   : > { %p173_p10 = scmp.lt.s32.totalorder %s2492_s16, 1  ;;  %vm285_vm0 = vcmask 1046528   ;;  %s2441_s29 = smov 4   ;;  %vm366_vm1 = vcmask 1045504   ;;  %vm1602_vm2 = vcmask 1043456   ;;  %vm1241_vm3 = vcmask 31744  }
  0x16   : > { %s2442_s30 = smov 8   ;;  %s2443_s4 = smov 12   ;;  %vm1274_vm4 = vcmask 64512   ;;  %vm1307_vm5 = vcmask 97280   ;;  %vm1340_vm6 = vcmask 130048   ;;  %vm1373_vm7 = vcmask 162816  }
  0x17   : > { %s174_s24 = scalar_select %p173_p10, %s2492_s16, 1  ;;  %vm1406_vm8 = vcmask 195584   ;;  %vm1439_vm9 = vcmask 228352   ;;  %vm1472_vm10 = vcmask 261120   ;;  %vm1505_vm11 = vcmask 293888  }
  0x18   : > { %s2444_s5 = smov 16   ;;  %s2445_s8 = smov 20   ;;  %vm2003_vm12 = vcmask 57344  }
  0x19   : > { %s2266_s25 = smul.u32 432, %s174_s24  ;;  %s2446_s24 = smov 24  }
  0x1a   : > { %s2447_s27 = smov 28  }
  0x1b   : > { %s2524_s28 = scalar_lea.vmem %s4229_s0, %s2266_s25 }
  0x1c   : > { %v2527_v0 = vld [vmem:[%s2524_s28 + $0x18] sm:$0xff]  ;;  %v2530_v1 = vld [vmem:[%s2524_s28 + $0x20] sm:$0xff]  ;;  %v2538_v5 = vld [vmem:[%s2524_s28 + $0x8] sm:$0xff] }
  0x1d   : > { %v2533_v2 = vld [vmem:[%s2524_s28] sm:$0xff]  ;;  %v291_v3 = vrot.slane %v2527_v0, 1  ;;  %v292_v4 = vrot.slane %v2530_v1, 1  ;;  %4310 = vst [vmem:[#allocation9_spill] sm:$0xff] %v2538_v5  ;;  %v2542_v7 = vld [vmem:[%s2524_s28 + $0x28] sm:$0x3] }
  0x1e   : > { %4309 = vst [vmem:[#allocation8_spill] sm:$0xff] %v2533_v2  ;;  %v286_v6 = vrot.slane %v2533_v2, 1  ;;  %v287_v8 = vrot.slane %v2538_v5, 1  ;;  %v294_v9 = vrot.slane %v2542_v7, 1  ;;  %v2547_v10 = vld [vmem:[%s2524_s28 + $0x10] sm:$0x3] }
  0x1f   : > { %v2550_v11 = vld [vmem:[%s2524_s28 + $0x38] sm:$0xff]  ;;  %v2553_v12 = vsel %vm285_vm0, %v291_v3, %v292_v4  ;;  %v289_v13 = vrot.slane %v2547_v10, 1  ;;  %v2557_v14 = vld [vmem:[%s2524_s28 + $0x40] sm:$0x3]  ;;  %v2560_v15 = vld [vmem:[%s2524_s28 + $0x30] sm:$0xff] }
  0x20   : > { %477 = vrot.lane.b32.xlu1 %v2553_v12, %s2441_s29  ;;  %v288_v16 = vsel %vm285_vm0, %v286_v6, %v287_v8  ;;  %v2567_v17 = vsel %vm285_vm0, %v292_v4, %v294_v9  ;;  %v297_v18 = vrot.slane %v2550_v11, 1  ;;  %v299_v19 = vrot.slane %v2557_v14, 1  ;;  %v2574_v22 = vld [vmem:[%s2524_s28 + $0x50] sm:$0xff]  ;;  %v2577_v23 = vld [vmem:[%s2524_s28 + $0x58] sm:$0x3]  ;;  %v2580_v24 = vld [vmem:[%s2524_s28 + $0x48] sm:$0xff] }
  0x21   : > { %473 = vrot.lane.b32.xlu0 %v288_v16, %s2441_s29  ;;  %v290_v20 = vsel %vm285_vm0, %v287_v8, %v289_v13  ;;  %v296_v21 = vrot.slane %v2560_v15, 1  ;;  %v302_v26 = vrot.slane %v2574_v22, 1  ;;  %v304_v27 = vrot.slane %v2577_v23, 1  ;;  %v2595_v30 = vld [vmem:[%s2524_s28 + $0x68] sm:$0xff]  ;;  %v2598_v31 = vld [vmem:[%s2524_s28 + $0x70] sm:$0x3] }
  0x22   : > { %v2586_v25 = vsel %vm285_vm0, %v297_v18, %v299_v19  ;;  %v301_v29 = vrot.slane %v2580_v24, 1  ;;  %v2601_v32 = vld [vmem:[%s2524_s28 + $0x60] sm:$0xff]  ;;  %v307_v34 = vrot.slane %v2595_v30, 1  ;;  %v309_v35 = vrot.slane %v2598_v31, 1  ;;  %v2620_v39 = vld [vmem:[%s2524_s28 + $0x88] sm:$0x3] }
  0x23   : > { %v2591_v28 = vsel %vm285_vm0, %v296_v21, %v297_v18  ;;  %v2608_v33 = vsel %vm285_vm0, %v302_v26, %v304_v27  ;;  %v306_v37 = vrot.slane %v2601_v32, 1  ;;  %v2617_v38 = vld [vmem:[%s2524_s28 + $0x80] sm:$0xff]  ;;  %v2623_v40 = vld [vmem:[%s2524_s28 + $0x78] sm:$0xff]  ;;  %v314_v43 = vrot.slane %v2620_v39, 1  ;;  %v2645_v48 = vld [vmem:[%s2524_s28 + $0x90] sm:$0xff] }
  0x24   : > { %479 = vrot.lane.b32.xlu1 %v2567_v17, %s2441_s29  ;;  %4311 = vst [vmem:[#allocation10_spill] sm:$0xff] %v2608_v33  ;;  %v2613_v36 = vsel %vm285_vm0, %v301_v29, %v302_v26  ;;  %v2630_v41 = vsel %vm285_vm0, %v307_v34, %v309_v35  ;;  %v312_v42 = vrot.slane %v2617_v38, 1  ;;  %v311_v45 = vrot.slane %v2623_v40, 1  ;;  %v2639_v46 = vld [vmem:[%s2524_s28 + $0x98] sm:$0xff]  ;;  %v2642_v47 = vld [vmem:[%s2524_s28 + $0xa0] sm:$0x3] }
  0x25   : > { %475 = vrot.lane.b32.xlu0 %v290_v20, %s2441_s29  ;;  %4312 = vst [vmem:[#allocation11_spill] sm:$0xff] %v2630_v41  ;;  %v2635_v44 = vsel %vm285_vm0, %v306_v37, %v307_v34  ;;  %v317_v50 = vrot.slane %v2639_v46, 1  ;;  %v319_v51 = vrot.slane %v2642_v47, 1  ;;  %v316_v53 = vrot.slane %v2645_v48, 1  ;;  %v2661_v54 = vld [vmem:[%s2524_s28 + $0xb0] sm:$0xff]  ;;  %v2667_v56 = vld [vmem:[%s2524_s28 + $0xa8] sm:$0xff] }
  0x26   : > { %4313 = vst [vmem:[#allocation12_spill] sm:$0xff] %v2635_v44  ;;  %v2652_v49 = vsel %vm285_vm0, %v312_v42, %v314_v43  ;;  %v2657_v52 = vsel %vm285_vm0, %v311_v45, %v312_v42  ;;  %v2664_v55 = vld [vmem:[%s2524_s28 + $0xb8] sm:$0x3]  ;;  %v322_v58 = vrot.slane %v2661_v54, 1  ;;  %v321_v61 = vrot.slane %v2667_v56, 1  ;;  %v2683_v62 = vld [vmem:[%s2524_s28 + $0xc8] sm:$0xff] }
  0x27   : > { %4314 = vst [vmem:[#allocation13_spill] sm:$0xff] %v2652_v49  ;;  %4315 = vst [vmem:[#allocation14_spill] sm:$0xff] %v2657_v52  ;;  %v2674_v57 = vsel %vm285_vm0, %v317_v50, %v319_v51  ;;  %v324_v59 = vrot.slane %v2664_v55, 1  ;;  %v2679_v60 = vsel %vm285_vm0, %v316_v53, %v317_v50  ;;  %v2686_v63 = vld [vmem:[%s2524_s28 + $0xd0] sm:$0x3]  ;;  %v2689_v3 = vld [vmem:[%s2524_s28 + $0xc0] sm:$0xff] }
  0x28   : > { %483 = vrot.lane.b32.xlu1 %v2586_v25, %s2441_s29  ;;  %4316 = vst [vmem:[#allocation15_spill] sm:$0xff] %v2674_v57  ;;  %4317 = vst [vmem:[#allocation16_spill] sm:$0xff] %v2679_v60  ;;  %v327_v6 = vrot.slane %v2683_v62, 1  ;;  %v329_v8 = vrot.slane %v2686_v63, 1  ;;  %v2701_v9 = vsel %vm285_vm0, %v321_v61, %v322_v58  ;;  %v326_v13 = vrot.slane %v2689_v3, 1  ;;  %v2705_v16 = vld [vmem:[%s2524_s28 + $0xe0] sm:$0xff] }
  0x29   : > { %481 = vrot.lane.b32.xlu0 %v2591_v28, %s2441_s29  ;;  %v2696_v4 = vsel %vm285_vm0, %v322_v58, %v324_v59  ;;  %4319 = vst [vmem:[#allocation18_spill] sm:$0xff] %v2701_v9  ;;  %v2708_v18 = vld [vmem:[%s2524_s28 + $0xe8] sm:$0x3]  ;;  %v2711_v19 = vld [vmem:[%s2524_s28 + $0xd8] sm:$0xff]  ;;  %v332_v21 = vrot.slane %v2705_v16, 1  ;;  %v2733_v37 = vld [vmem:[%s2524_s28 + $0xf0] sm:$0xff] }
  0x2a   : > { %4318 = vst [vmem:[#allocation17_spill] sm:$0xff] %v2696_v4  ;;  %v2718_v20 = vsel %vm285_vm0, %v327_v6, %v329_v8  ;;  %v334_v26 = vrot.slane %v2708_v18, 1  ;;  %v2723_v27 = vsel %vm285_vm0, %v326_v13, %v327_v6  ;;  %v331_v29 = vrot.slane %v2711_v19, 1  ;;  %v2727_v34 = vld [vmem:[%s2524_s28 + $0xf8] sm:$0xff]  ;;  %v2730_v35 = vld [vmem:[%s2524_s28 + $0x100] sm:$0x3] }
  0x2b   : > { %4320 = vst [vmem:[#allocation19_spill] sm:$0xff] %v2718_v20  ;;  %4321 = vst [vmem:[#allocation20_spill] sm:$0xff] %v2723_v27  ;;  %v337_v43 = vrot.slane %v2727_v34, 1  ;;  %v339_v45 = vrot.slane %v2730_v35, 1  ;;  %v336_v51 = vrot.slane %v2733_v37, 1  ;;  %v2749_v53 = vld [vmem:[%s2524_s28 + $0x110] sm:$0xff] }
  0x2c   : > { %487 = vrot.lane.b32.xlu1 %v2608_v33, %s2441_s29  ;;  %v2740_v42 = vsel %vm285_vm0, %v332_v21, %v334_v26  ;;  %v2745_v50 = vsel %vm285_vm0, %v331_v29, %v332_v21  ;;  %v2752_v58 = vld [vmem:[%s2524_s28 + $0x118] sm:$0x3]  ;;  %v2755_v59 = vld [vmem:[%s2524_s28 + $0x108] sm:$0xff]  ;;  %v342_v6 = vrot.slane %v2749_v53, 1  ;;  %v2774_v29 = vld [vmem:[%s2524_s28 + $0x130] sm:$0x3] }
  0x2d   : > { %485 = vrot.lane.b32.xlu0 %v2613_v36, %s2441_s29  ;;  %4322 = vst [vmem:[#allocation21_spill] sm:$0xff] %v2740_v42  ;;  %4323 = vst [vmem:[#allocation22_spill] sm:$0xff] %v2745_v50  ;;  %v2762_v61 = vsel %vm285_vm0, %v337_v43, %v339_v45  ;;  %v344_v8 = vrot.slane %v2752_v58, 1  ;;  %v2767_v13 = vsel %vm285_vm0, %v336_v51, %v337_v43  ;;  %v341_v21 = vrot.slane %v2755_v59, 1  ;;  %v2771_v26 = vld [vmem:[%s2524_s28 + $0x128] sm:$0xff] }
  0x2e   : > { %4324 = vst [vmem:[#allocation23_spill] sm:$0xff] %v2762_v61  ;;  %4325 = vst [vmem:[#allocation24_spill] sm:$0xff] %v2767_v13  ;;  %v347_v43 = vrot.slane %v2771_v26, 1  ;;  %v349_v51 = vrot.slane %v2774_v29, 1 }
  0x2f   : > { %v2784_v45 = vsel %vm285_vm0, %v342_v6, %v344_v8 }
  0x30   : > { %491 = vrot.lane.b32.xlu1 %v2630_v41, %s2441_s29  ;;  %4326 = vst [vmem:[#allocation25_spill] sm:$0xff] %v2784_v45  ;;  %v2806_v8 = vsel %vm285_vm0, %v347_v43, %v349_v51  ;;  %v2840_v41 = vld [vmem:[%s2524_s28 + $0x178] sm:$0x3] }
  0x31   : > { %489 = vrot.lane.b32.xlu0 %v2635_v44, %s2441_s29  ;;  %4328 = vst [vmem:[#allocation27_spill] sm:$0xff] %v2806_v8 }
  0x34   : > { %495 = vrot.lane.b32.xlu1 %v2652_v49, %s2441_s29 }
  0x35   : > { %493 = vrot.lane.b32.xlu0 %v2657_v52, %s2441_s29  ;;  %v2837_v52 = vld [vmem:[%s2524_s28 + $0x170] sm:$0xff] }
  0x38   : > { %499 = vrot.lane.b32.xlu1 %v2674_v57, %s2441_s29  ;;  %v2815_v57 = vld [vmem:[%s2524_s28 + $0x158] sm:$0xff] }
  0x39   : > { %497 = vrot.lane.b32.xlu0 %v2679_v60, %s2441_s29 }
  0x3c   : > { %503 = vrot.lane.b32.xlu1 %v2696_v4, %s2441_s29 }
  0x3d   : > { %501 = vrot.lane.b32.xlu0 %v2701_v9, %s2441_s29 }
  0x40   : > { %507 = vrot.lane.b32.xlu1 %v2718_v20, %s2441_s29 }
  0x41   : > { %505 = vrot.lane.b32.xlu0 %v2723_v27, %s2441_s29  ;;  %v2793_v27 = vld [vmem:[%s2524_s28 + $0x140] sm:$0xff] }
  0x44   : > { %511 = vrot.lane.b32.xlu1 %v2740_v42, %s2441_s29  ;;  %v2777_v42 = vld [vmem:[%s2524_s28 + $0x120] sm:$0xff] }
  0x45   : > { %509 = vrot.lane.b32.xlu0 %v2745_v50, %s2441_s29  ;;  %v2789_v50 = vsel %vm285_vm0, %v341_v21, %v342_v6  ;;  %v346_v20 = vrot.slane %v2777_v42, 1  ;;  %v352_v6 = vrot.slane %v2793_v27, 1 }
  0x46   : > { %4327 = vst [vmem:[#allocation26_spill] sm:$0xff] %v2789_v50 }
  0x47   : > { %v2811_v4 = vsel %vm285_vm0, %v346_v20, %v347_v43  ;;  %v357_v20 = vrot.slane %v2815_v57, 1 }
  0x48   : > { %515 = vrot.lane.b32.xlu1 %v2762_v61, %s2441_s29  ;;  %v2796_v61 = vld [vmem:[%s2524_s28 + $0x148] sm:$0x3]  ;;  %4329 = vst [vmem:[#allocation28_spill] sm:$0xff] %v2811_v4 }
  0x49   : > { %513 = vrot.lane.b32.xlu0 %v2767_v13, %s2441_s29  ;;  %v2799_v13 = vld [vmem:[%s2524_s28 + $0x138] sm:$0xff]  ;;  %v354_v21 = vrot.slane %v2796_v61, 1 }
  0x4a   : > { %v351_v9 = vrot.slane %v2799_v13, 1 }
  0x4b   : > { %v2828_v51 = vsel %vm285_vm0, %v352_v6, %v354_v21 }
  0x4c   : > { %519 = vrot.lane.b32.xlu1 %v2784_v45, %s2441_s29  ;;  %v2818_v45 = vld [vmem:[%s2524_s28 + $0x160] sm:$0x3]  ;;  %4330 = vst [vmem:[#allocation29_spill] sm:$0xff] %v2828_v51  ;;  %v2833_v60 = vsel %vm285_vm0, %v351_v9, %v352_v6  ;;  %v362_v9 = vrot.slane %v2837_v52, 1  ;;  %v364_v6 = vrot.slane %v2840_v41, 1 }
  0x4d   : > { %517 = vrot.lane.b32.xlu0 %v2789_v50, %s2441_s29  ;;  %v2821_v50 = vld [vmem:[%s2524_s28 + $0x150] sm:$0xff]  ;;  %v359_v43 = vrot.slane %v2818_v45, 1  ;;  %4331 = vst [vmem:[#allocation30_spill] sm:$0xff] %v2833_v60 }
  0x4e   : > { %v356_v49 = vrot.slane %v2821_v50, 1 }
  0x4f   : > { %v2850_v21 = vsel %vm285_vm0, %v357_v20, %v359_v43  ;;  %v368_v43 = vrot.slane %v2538_v5, 2  ;;  %v405_v5 = vrot.slane %v2664_v55, 2 }
  0x50   : > { %523 = vrot.lane.b32.xlu1 %v2806_v8, %s2441_s29  ;;  %v2843_v8 = vld [vmem:[%s2524_s28 + $0x168] sm:$0xff]  ;;  %4332 = vst [vmem:[#allocation31_spill] sm:$0xff] %v2850_v21 }
  0x51   : > { %521 = vrot.lane.b32.xlu0 %v2811_v4, %s2441_s29  ;;  %v2855_v4 = vsel %vm285_vm0, %v356_v49, %v357_v20  ;;  %v361_v44 = vrot.slane %v2843_v8, 1  ;;  %v367_v49 = vrot.slane %v2533_v2, 2  ;;  %v410_v2 = vrot.slane %v2686_v63, 2 }
  0x52   : > { %4333 = vst [vmem:[#allocation32_spill] sm:$0xff] %v2855_v4 }
  0x53   : > { %v2868_v33 = vsel %vm285_vm0, %v361_v44, %v362_v9  ;;  %v372_v44 = vrot.slane %v2527_v0, 2 }
  0x54   : > { %527 = vrot.lane.b32.xlu1 %v2828_v51, %s2441_s29  ;;  %v2863_v51 = vsel %vm285_vm0, %v362_v9, %v364_v6  ;;  %4335 = vst [vmem:[#allocation34_spill] sm:$0xff] %v2868_v33  ;;  %v373_v6 = vrot.slane %v2530_v1, 2 }
  0x55   : > { %525 = vrot.lane.b32.xlu0 %v2833_v60, %s2441_s29  ;;  %4334 = vst [vmem:[#allocation33_spill] sm:$0xff] %v2863_v51  ;;  %v370_v60 = vrot.slane %v2547_v10, 2  ;;  %v369_v10 = vsel %vm366_vm1, %v367_v49, %v368_v43  ;;  %v385_v49 = vrot.slane %v2577_v23, 2 }
  0x57   : > { %v371_v20 = vsel %vm366_vm1, %v368_v43, %v370_v60  ;;  %v380_v60 = vrot.slane %v2557_v14, 2 }
  0x58   : > { %531 = vrot.lane.b32.xlu1 %v2850_v21, %s2441_s29  ;;  %v375_v21 = vrot.slane %v2542_v7, 2  ;;  %v377_v7 = vrot.slane %v2560_v15, 2 }
  0x59   : > { %529 = vrot.lane.b32.xlu0 %v2855_v4, %s2441_s29  ;;  %v400_v4 = vrot.slane %v2642_v47, 2 }
  0x5a   : > { %v2883_v9 = vsel %vm366_vm1, %v373_v6, %v375_v21  ;;  %v383_v21 = vrot.slane %v2574_v22, 2 }
  0x5c   : > { %535 = vrot.lane.b32.xlu1 %v2863_v51, %s2441_s29  ;;  %v378_v51 = vrot.slane %v2550_v11, 2 }
  0x5d   : > { %533 = vrot.lane.b32.xlu0 %v2868_v33, %s2441_s29  ;;  %v2888_v33 = vsel %vm366_vm1, %v372_v44, %v373_v6  ;;  %v2909_v6 = vsel %vm366_vm1, %v383_v21, %v385_v49  ;;  %v390_v44 = vrot.slane %v2598_v31, 2  ;;  %v395_v49 = vrot.slane %v2620_v39, 2  ;;  %s2448_s29 = smov 32  }
  0x5e   : > { %v2896_v43 = vsel %vm366_vm1, %v378_v51, %v380_v60  ;;  %v2901_v14 = vsel %vm366_vm1, %v377_v7, %v378_v51  ;;  %v387_v51 = vrot.slane %v2601_v32, 2  ;;  %v393_v7 = vrot.slane %v2617_v38, 2 }
  0x60   : > { %571 = vrot.lane.b32.xlu1 %v371_v20, %s2442_s30  ;;  %v382_v20 = vrot.slane %v2580_v24, 2 }
  0x61   : > { %569 = vrot.lane.b32.xlu0 %v369_v10, %s2442_s30  ;;  %v388_v10 = vrot.slane %v2595_v30, 2 }
  0x62   : > { %v2914_v23 = vsel %vm366_vm1, %v382_v20, %v383_v21  ;;  %v392_v21 = vrot.slane %v2623_v40, 2  ;;  %v2935_v20 = vsel %vm366_vm1, %v393_v7, %v395_v49  ;;  %v403_v49 = vrot.slane %v2661_v54, 2 }
  0x63   : > { %v2922_v60 = vsel %vm366_vm1, %v388_v10, %v390_v44  ;;  %v2927_v31 = vsel %vm366_vm1, %v387_v51, %v388_v10  ;;  %v398_v44 = vrot.slane %v2639_v46, 2  ;;  %v397_v10 = vrot.slane %v2645_v48, 2 }
  0x64   : > { %575 = vrot.lane.b32.xlu1 %v2883_v9, %s2442_s30  ;;  %v2940_v39 = vsel %vm366_vm1, %v392_v21, %v393_v7  ;;  %v402_v7 = vrot.slane %v2667_v56, 2  ;;  %v2961_v21 = vsel %vm366_vm1, %v403_v49, %v405_v5  ;;  %v413_v5 = vrot.slane %v2705_v16, 2 }
  0x65   : > { %573 = vrot.lane.b32.xlu0 %v2888_v33, %s2442_s30  ;;  %v2948_v51 = vsel %vm366_vm1, %v398_v44, %v400_v4  ;;  %v2953_v47 = vsel %vm366_vm1, %v397_v10, %v398_v44  ;;  %4337 = vst [vmem:[#allocation36_spill] sm:$0xff] %v2961_v21  ;;  %v408_v4 = vrot.slane %v2683_v62, 2  ;;  %v407_v44 = vrot.slane %v2689_v3, 2 }
  0x66   : > { %4336 = vst [vmem:[#allocation35_spill] sm:$0xff] %v2948_v51  ;;  %v2966_v55 = vsel %vm366_vm1, %v402_v7, %v403_v49  ;;  %v412_v49 = vrot.slane %v2711_v19, 2 }
  0x67   : > { %v2974_v10 = vsel %vm366_vm1, %v408_v4, %v410_v2  ;;  %v2979_v63 = vsel %vm366_vm1, %v407_v44, %v408_v4  ;;  %v418_v2 = vrot.slane %v2727_v34, 2  ;;  %v417_v4 = vrot.slane %v2733_v37, 2 }
  0x68   : > { %579 = vrot.lane.b32.xlu1 %v2896_v43, %s2442_s30  ;;  %4338 = vst [vmem:[#allocation37_spill] sm:$0xff] %v2974_v10 }
  0x69   : > { %577 = vrot.lane.b32.xlu0 %v2901_v14, %s2442_s30 }
  0x6c   : > { %583 = vrot.lane.b32.xlu1 %v2909_v6, %s2442_s30 }
  0x6d   : > { %581 = vrot.lane.b32.xlu0 %v2914_v23, %s2442_s30 }
  0x70   : > { %587 = vrot.lane.b32.xlu1 %v2922_v60, %s2442_s30 }
  0x71   : > { %585 = vrot.lane.b32.xlu0 %v2927_v31, %s2442_s30 }
  0x74   : > { %591 = vrot.lane.b32.xlu1 %v2935_v20, %s2442_s30 }
  0x75   : > { %589 = vrot.lane.b32.xlu0 %v2940_v39, %s2442_s30 }
  0x78   : > { %595 = vrot.lane.b32.xlu1 %v2948_v51, %s2442_s30  ;;  %v415_v51 = vrot.slane %v2708_v18, 2  ;;  %v2992_v18 = vsel %vm366_vm1, %v412_v49, %v413_v5 }
  0x79   : > { %593 = vrot.lane.b32.xlu0 %v2953_v47, %s2442_s30 }
  0x7a   : > { %v2987_v7 = vsel %vm366_vm1, %v413_v5, %v415_v51  ;;  %v423_v51 = vrot.slane %v2749_v53, 2  ;;  %v422_v5 = vrot.slane %v2755_v59, 2 }
  0x7b   : > { %4339 = vst [vmem:[#allocation38_spill] sm:$0xff] %v2987_v7 }
  0x7c   : > { %599 = vrot.lane.b32.xlu1 %v2961_v21, %s2442_s30  ;;  %v420_v21 = vrot.slane %v2730_v35, 2  ;;  %v3005_v35 = vsel %vm366_vm1, %v417_v4, %v418_v2 }
  0x7d   : > { %597 = vrot.lane.b32.xlu0 %v2966_v55, %s2442_s30 }
  0x7e   : > { %v3000_v44 = vsel %vm366_vm1, %v418_v2, %v420_v21  ;;  %v428_v21 = vrot.slane %v2771_v26, 2  ;;  %v427_v2 = vrot.slane %v2777_v42, 2  ;;  %v435_v26 = vrot.slane %v2796_v61, 2 }
  0x80   : > { %603 = vrot.lane.b32.xlu1 %v2974_v10, %s2442_s30  ;;  %v425_v10 = vrot.slane %v2752_v58, 2  ;;  %v3018_v58 = vsel %vm366_vm1, %v422_v5, %v423_v51 }
  0x81   : > { %601 = vrot.lane.b32.xlu0 %v2979_v63, %s2442_s30 }
  0x82   : > { %v3013_v49 = vsel %vm366_vm1, %v423_v51, %v425_v10  ;;  %v433_v10 = vrot.slane %v2793_v27, 2  ;;  %v432_v51 = vrot.slane %v2799_v13, 2  ;;  %v440_v27 = vrot.slane %v2818_v45, 2 }
  0x83   : > { %4340 = vst [vmem:[#allocation39_spill] sm:$0xff] %v3013_v49  ;;  %v437_v13 = vrot.slane %v2821_v50, 2  ;;  %v445_v45 = vrot.slane %v2840_v41, 2  ;;  %v442_v50 = vrot.slane %v2843_v8, 2 }
  0x84   : > { %607 = vrot.lane.b32.xlu1 %v2987_v7, %s2442_s30  ;;  %v430_v7 = vrot.slane %v2774_v29, 2  ;;  %v3031_v29 = vsel %vm366_vm1, %v427_v2, %v428_v21  ;;  %v3039_v5 = vsel %vm366_vm1, %v433_v10, %v435_v26  ;;  %v3046_v61 = vsel %vm366_vm1, %v432_v51, %v433_v10 }
  0x85   : > { %605 = vrot.lane.b32.xlu0 %v2992_v18, %s2442_s30  ;;  %4341 = vst [vmem:[#allocation40_spill] sm:$0xff] %v3039_v5  ;;  %4342 = vst [vmem:[#allocation41_spill] sm:$0xff] %v3046_v61 }
  0x86   : > { %v3026_v4 = vsel %vm366_vm1, %v428_v21, %v430_v7  ;;  %v438_v7 = vrot.slane %v2815_v57, 2  ;;  %v443_v57 = vrot.slane %v2837_v52, 2 }
  0x88   : > { %611 = vrot.lane.b32.xlu1 %v3000_v44, %s2442_s30  ;;  %v3056_v2 = vsel %vm366_vm1, %v438_v7, %v440_v27  ;;  %v3063_v10 = vsel %vm366_vm1, %v437_v13, %v438_v7  ;;  %v3073_v27 = vsel %vm366_vm1, %v443_v57, %v445_v45  ;;  %v3078_v41 = vsel %vm366_vm1, %v442_v50, %v443_v57 }
  0x89   : > { %609 = vrot.lane.b32.xlu0 %v3005_v35, %s2442_s30  ;;  %4343 = vst [vmem:[#allocation42_spill] sm:$0xff] %v3056_v2  ;;  %4344 = vst [vmem:[#allocation43_spill] sm:$0xff] %v3063_v10 }
  0x8a   : > { %4345 = vst [vmem:[#allocation44_spill] sm:$0xff] %v3073_v27  ;;  %4346 = vst [vmem:[#allocation45_spill] sm:$0xff] %v3078_v41 }
  0x8c   : > { %615 = vrot.lane.b32.xlu1 %v3013_v49, %s2442_s30 }
  0x8d   : > { %613 = vrot.lane.b32.xlu0 %v3018_v58, %s2442_s30 }
  0x90   : > { %619 = vrot.lane.b32.xlu1 %v3026_v4, %s2442_s30 }
  0x91   : > { %617 = vrot.lane.b32.xlu0 %v3031_v29, %s2442_s30 }
  0x92   : > { %v3043_v49 = vpop.permute.xlu1 %477 }
  0x93   : > { %v3049_v21 = vpop.permute.xlu0 %473 }
  0x94   : > { %623 = vrot.lane.b32.xlu1 %v3039_v5, %s2442_s30 }
  0x95   : > { %621 = vrot.lane.b32.xlu0 %v3046_v61, %s2442_s30 }
  0x96   : > { %v3060_v26 = vpop.permute.xlu1 %479 }
  0x97   : > { %v3066_v51 = vpop.permute.xlu0 %475 }
  0x98   : > { %627 = vrot.lane.b32.xlu1 %v3056_v2, %s2442_s30 }
  0x99   : > { %625 = vrot.lane.b32.xlu0 %v3063_v10, %s2442_s30 }
  0x9a   : > { %v3075_v52 = vpop.permute.xlu1 %483 }
  0x9b   : > { %v3080_v7 = vpop.permute.xlu0 %481 }
  0x9c   : > { %631 = vrot.lane.b32.xlu1 %v3073_v27, %s2442_s30 }
  0x9d   : > { %629 = vrot.lane.b32.xlu0 %v3078_v41, %s2442_s30  ;;  %s2157_s30 = sshll.u32 %s2492_s16, 4 }
  0x9e   : > { %v3086_v8 = vpop.permute.xlu1 %487  ;;  %s4155_s10 = scalar_lea.hbm %s4231_s2, %s2157_s30  ;;  %s4163_s17 = scalar_lea.hbm %s4232_s3, %s2157_s30 }
  0x9f   : > { %v3088_v13 = vpop.permute.xlu0 %485 }
  0xa0   : > { %667 = vrot.lane.b32.xlu1 %v2530_v1, %s2443_s4 }
  0xa1   : > { %665 = vrot.lane.b32.xlu0 %v2527_v0, %s2443_s4 }
  0xa2   : > { %v3094_v57 = vpop.permute.xlu1 %491 }
  0xa3   : > { %v3096_v45 = vpop.permute.xlu0 %489 }
  0xa4   : > { %671 = vrot.lane.b32.xlu1 %v2550_v11, %s2443_s4 }
  0xa5   : > { %669 = vrot.lane.b32.xlu0 %v2560_v15, %s2443_s4 }
  0xa6   : > { %v3102_v50 = vpop.permute.xlu1 %495 }
  0xa7   : > { %v3104_v27 = vpop.permute.xlu0 %493 }
  0xa8   : > { %675 = vrot.lane.b32.xlu1 %v2574_v22, %s2443_s4 }
  0xa9   : > { %673 = vrot.lane.b32.xlu0 %v2580_v24, %s2443_s4 }
  0xaa   : > { %v3110_v0 = vpop.permute.xlu1 %499 }
  0xab   : > { %4347 = vst [vmem:[#allocation46_spill] sm:$0xff] %v3110_v0  ;;  %v3112_v1 = vpop.permute.xlu0 %497 }
  0xac   : > { %4348 = vst [vmem:[#allocation47_spill] sm:$0xff] %v3112_v1  ;;  %679 = vrot.lane.b32.xlu1 %v2595_v30, %s2443_s4  ;;  %v4371_v1 = vld [vmem:[#allocation10_spill] sm:$0xff] }
  0xad   : > { %677 = vrot.lane.b32.xlu0 %v2601_v32, %s2443_s4 }
  0xae   : > { %v3118_v41 = vpop.permute.xlu1 %503 }
  0xaf   : > { %4349 = vst [vmem:[#allocation48_spill] sm:$0xff] %v3118_v41  ;;  %v3120_v2 = vpop.permute.xlu0 %501 }
  0xb0   : > { %4350 = vst [vmem:[#allocation49_spill] sm:$0xff] %v3120_v2  ;;  %683 = vrot.lane.b32.xlu1 %v2617_v38, %s2443_s4 }
  0xb1   : > { %681 = vrot.lane.b32.xlu0 %v2623_v40, %s2443_s4 }
  0xb2   : > { %v3126_v10 = vpop.permute.xlu1 %507 }
  0xb3   : > { %4351 = vst [vmem:[#allocation50_spill] sm:$0xff] %v3126_v10  ;;  %v3128_v5 = vpop.permute.xlu0 %505 }
  0xb4   : > { %4352 = vst [vmem:[#allocation51_spill] sm:$0xff] %v3128_v5  ;;  %687 = vrot.lane.b32.xlu1 %v2639_v46, %s2443_s4 }
  0xb5   : > { %685 = vrot.lane.b32.xlu0 %v2645_v48, %s2443_s4 }
  0xb6   : > { %v3134_v0 = vpop.permute.xlu1 %511 }
  0xb7   : > { %4353 = vst [vmem:[#allocation52_spill] sm:$0xff] %v3134_v0  ;;  %v3136_v41 = vpop.permute.xlu0 %509 }
  0xb8   : > { %4354 = vst [vmem:[#allocation53_spill] sm:$0xff] %v3136_v41  ;;  %691 = vrot.lane.b32.xlu1 %v2661_v54, %s2443_s4 }
  0xb9   : > { %689 = vrot.lane.b32.xlu0 %v2667_v56, %s2443_s4 }
  0xba   : > { %v3142_v2 = vpop.permute.xlu1 %515 }
  0xbb   : > { %4355 = vst [vmem:[#allocation54_spill] sm:$0xff] %v3142_v2  ;;  %v3144_v10 = vpop.permute.xlu0 %513 }
  0xbc   : > { %4356 = vst [vmem:[#allocation55_spill] sm:$0xff] %v3144_v10  ;;  %695 = vrot.lane.b32.xlu1 %v2683_v62, %s2443_s4 }
  0xbd   : > { %693 = vrot.lane.b32.xlu0 %v2689_v3, %s2443_s4 }
  0xbe   : > { %v3150_v5 = vpop.permute.xlu1 %519 }
  0xbf   : > { %4357 = vst [vmem:[#allocation56_spill] sm:$0xff] %v3150_v5  ;;  %v3152_v0 = vpop.permute.xlu0 %517 }
  0xc0   : > { %4358 = vst [vmem:[#allocation57_spill] sm:$0xff] %v3152_v0  ;;  %699 = vrot.lane.b32.xlu1 %v2705_v16, %s2443_s4 }
  0xc1   : > { %697 = vrot.lane.b32.xlu0 %v2711_v19, %s2443_s4 }
  0xc2   : > { %v3158_v41 = vpop.permute.xlu1 %523 }
  0xc3   : > { %4359 = vst [vmem:[#allocation58_spill] sm:$0xff] %v3158_v41  ;;  %v3160_v2 = vpop.permute.xlu0 %521 }
  0xc4   : > { %4360 = vst [vmem:[#allocation59_spill] sm:$0xff] %v3160_v2  ;;  %703 = vrot.lane.b32.xlu1 %v2727_v34, %s2443_s4 }
  0xc5   : > { %701 = vrot.lane.b32.xlu0 %v2733_v37, %s2443_s4 }
  0xc6   : > { %v3166_v10 = vpop.permute.xlu1 %527 }
  0xc7   : > { %4361 = vst [vmem:[#allocation60_spill] sm:$0xff] %v3166_v10  ;;  %v3168_v5 = vpop.permute.xlu0 %525  ;;  %v182_v10 = vld [vmem:[%s4230_s1 + $0x20] sm:$0xf] }
  0xc8   : > { %4362 = vst [vmem:[#allocation61_spill] sm:$0xff] %v3168_v5  ;;  %707 = vrot.lane.b32.xlu1 %v2749_v53, %s2443_s4  ;;  %2198 = vmatprep.subr.msk.mxu0 %vm1602_vm2, %v182_v10 }
  0xc9   : > { %705 = vrot.lane.b32.xlu0 %v2755_v59, %s2443_s4  ;;  %2256 = vmatprep.subr.msk.mxu1 %vm1602_vm2, %v182_v10 }
  0xca   : > { %v3174_v0 = vpop.permute.xlu1 %531  ;;  %2199 = vmatpush3.msk.msra.mxu0 %vm1602_vm2, %v182_v10  ;;  %2261 = vmatpush3.msk.msra.mxu1 %vm1602_vm2, %v182_v10 }
  0xcb   : > { %4363 = vst [vmem:[#allocation62_spill] sm:$0xff] %v3174_v0  ;;  %v3176_v41 = vpop.permute.xlu0 %529 }
  0xcc   : > { %4364 = vst [vmem:[#allocation63_spill] sm:$0xff] %v3176_v41  ;;  %761 = vrot.lane.b32.xlu1 %v2553_v12, %s2444_s5  ;;  %v181_v12 = vld [vmem:[%s4230_s1 + $0x18] sm:$0xff] }
  0xcd   : > { %709 = vrot.lane.b32.xlu0 %v2777_v42, %s2443_s4  ;;  %2200 = vmatprep.subr.mxu0 %v181_v12  ;;  %v180_v42 = vld [vmem:[%s4230_s1 + $0x10] sm:$0xff] }
  0xce   : > { %v3185_v53 = vpop.permute.xlu1 %535  ;;  %2201 = vmatpush3.msra.mxu0 %v181_v12  ;;  %2257 = vmatprep.subr.mxu1 %v181_v12 }
  0xcf   : > { %4365 = vst [vmem:[#allocation64_spill] sm:$0xff] %v3185_v53  ;;  %v3187_v5 = vpop.permute.xlu0 %533  ;;  %2202 = vmatprep.subr.mxu0 %v180_v42  ;;  %2262 = vmatpush3.msra.mxu1 %v181_v12 }
  0xd0   : > { %4366 = vst [vmem:[#allocation65_spill] sm:$0xff] %v3187_v5  ;;  %857 = vrot.lane.b32.xlu1 %v2888_v33, %s2445_s8  ;;  %v179_v33 = vld [vmem:[%s4230_s1 + $0x8] sm:$0xff]  ;;  %2203 = vmatpush3.msra.mxu0 %v180_v42 }
  0xd1   : > { %763 = vrot.lane.b32.xlu0 %v2567_v17, %s2444_s5  ;;  %2204 = vmatprep.subr.mxu0 %v179_v33  ;;  %v178_v17 = vld [vmem:[%s4230_s1] sm:$0xff] }
  0xd2   : > { %v3199_v53 = vpop.permute.xlu1 %571  ;;  %2205 = vmatpush3.msra.mxu0 %v179_v33  ;;  %2258 = vmatprep.subr.mxu1 %v180_v42 }
  0xd3   : > { %v3201_v10 = vpop.permute.xlu0 %569  ;;  %2206 = vmatprep.subr.mxu0 %v178_v17  ;;  %2263 = vmatpush3.msra.mxu1 %v180_v42 }
  0xd4   : > { %953 = vrot.lane.b32.xlu1 %v2560_v15, %s2446_s24  ;;  %2207 = vmatpush3.msra.mxu0 %v178_v17 }
  0xd5   : > { %859 = vrot.lane.b32.xlu0 %v2883_v9, %s2445_s8  ;;  %2259 = vmatprep.subr.mxu1 %v179_v33 }
  0xd6   : > { %v3213_v5 = vpop.permute.xlu1 %575  ;;  %2264 = vmatpush3.msra.mxu1 %v179_v33 }
  0xd7   : > { %v3215_v0 = vpop.permute.xlu0 %573  ;;  %2260 = vmatprep.subr.mxu1 %v178_v17 }
  0xd8   : > { %1049 = vrot.lane.b32.xlu1 %v2591_v28, %s2447_s27  ;;  %2265 = vmatpush3.msra.mxu1 %v178_v17 }
  0xd9   : > { %955 = vrot.lane.b32.xlu0 %v2550_v11, %s2446_s24 }
  0xda   : > { %v3221_v15 = vpop.permute.xlu1 %579 }
  0xdb   : > { %v3223_v9 = vpop.permute.xlu0 %577 }
  0xdc   : > { %1051 = vrot.lane.b32.xlu1 %v2586_v25, %s2447_s27 }
  0xdd   : > { %765 = vrot.lane.b32.xlu0 %v2591_v28, %s2444_s5 }
  0xde   : > { %v3229_v12 = vpop.permute.xlu1 %583 }
  0xdf   : > { %v3231_v42 = vpop.permute.xlu0 %581 }
  0xe0   : > { %767 = vrot.lane.b32.xlu1 %v2586_v25, %s2444_s5 }
  0xe1   : > { %1145 = vrot.lane.b32.xlu0 %v2901_v14, %s2448_s29 }
  0xe2   : > { %v3237_v11 = vpop.permute.xlu1 %587 }
  0xe3   : > { %v3239_v33 = vpop.permute.xlu0 %585 }
  0xe4   : > { %1147 = vrot.lane.b32.xlu1 %v2896_v43, %s2448_s29 }
  0xe5   : > { %861 = vrot.lane.b32.xlu0 %v2901_v14, %s2445_s8 }
  0xe6   : > { %v3245_v28 = vpop.permute.xlu1 %591 }
  0xe7   : > { %v3247_v17 = vpop.permute.xlu0 %589 }
  0xe8   : > { %957 = vrot.lane.b32.xlu1 %v2580_v24, %s2446_s24 }
  0xe9   : > { %863 = vrot.lane.b32.xlu0 %v2896_v43, %s2445_s8 }
  0xea   : > { %v3253_v25 = vpop.permute.xlu1 %595 }
  0xeb   : > { %4367 = vst [vmem:[#allocation66_spill] sm:$0xff] %v3253_v25  ;;  %v3255_v41 = vpop.permute.xlu0 %593  ;;  %v4401_v25 = vld [vmem:[#allocation35_spill] sm:$0xff] }
  0xec   : > { %4368 = vst [vmem:[#allocation67_spill] sm:$0xff] %v3255_v41  ;;  %1053 = vrot.lane.b32.xlu1 %v2613_v36, %s2447_s27 }
  0xed   : > { %959 = vrot.lane.b32.xlu0 %v2574_v22, %s2446_s24 }
  0xee   : > { %v3261_v14 = vpop.permute.xlu1 %599 }
  0xef   : > { %4369 = vst [vmem:[#allocation68_spill] sm:$0xff] %v3261_v14  ;;  %v3263_v2 = vpop.permute.xlu0 %597 }
  0xf0   : > { %4370 = vst [vmem:[#allocation69_spill] sm:$0xff] %v3263_v2  ;;  %1055 = vrot.lane.b32.xlu1 %v4371_v1, %s2447_s27  ;;  %v4396_v2 = vld [vmem:[#allocation15_spill] sm:$0xff] }
  0xf1   : > { %769 = vrot.lane.b32.xlu0 %v2613_v36, %s2444_s5 }
  0xf2   : > { %v3269_v24 = vpop.permute.xlu1 %603 }
  0xf3   : > { %4372 = vst [vmem:[#allocation10_spill] sm:$0xff] %v3269_v24  ;;  %v3271_v43 = vpop.permute.xlu0 %601 }
  0xf4   : > { %4373 = vst [vmem:[#allocation70_spill] sm:$0xff] %v3271_v43  ;;  %771 = vrot.lane.b32.xlu1 %v4371_v1, %s2444_s5 }
  0xf5   : > { %1149 = vrot.lane.b32.xlu0 %v2914_v23, %s2448_s29 }
  0xf6   : > { %v3277_v22 = vpop.permute.xlu1 %607 }
  0xf7   : > { %4374 = vst [vmem:[#allocation71_spill] sm:$0xff] %v3277_v22  ;;  %v3279_v14 = vpop.permute.xlu0 %605 }
  0xf8   : > { %4375 = vst [vmem:[#allocation72_spill] sm:$0xff] %v3279_v14  ;;  %1151 = vrot.lane.b32.xlu1 %v2909_v6, %s2448_s29  ;;  %v4380_v14 = vld [vmem:[#allocation12_spill] sm:$0xff] }
  0xf9   : > { %865 = vrot.lane.b32.xlu0 %v2914_v23, %s2445_s8 }
  0xfa   : > { %v3285_v36 = vpop.permute.xlu1 %611 }
  0xfb   : > { %4376 = vst [vmem:[#allocation73_spill] sm:$0xff] %v3285_v36  ;;  %v3287_v24 = vpop.permute.xlu0 %609 }
  0xfc   : > { %4377 = vst [vmem:[#allocation74_spill] sm:$0xff] %v3287_v24  ;;  %961 = vrot.lane.b32.xlu1 %v2601_v32, %s2446_s24  ;;  %v4383_v24 = vld [vmem:[#allocation11_spill] sm:$0xff] }
  0xfd   : > { %867 = vrot.lane.b32.xlu0 %v2909_v6, %s2445_s8 }
  0xfe   : > { %v3293_v1 = vpop.permute.xlu1 %615 }
  0xff   : > { %4378 = vst [vmem:[#allocation75_spill] sm:$0xff] %v3293_v1  ;;  %v3295_v22 = vpop.permute.xlu0 %613 }
 0x100   : > { %4379 = vst [vmem:[#allocation76_spill] sm:$0xff] %v3295_v22  ;;  %1057 = vrot.lane.b32.xlu1 %v4380_v14, %s2447_s27  ;;  %v4393_v22 = vld [vmem:[#allocation16_spill] sm:$0xff] }
 0x101   : > { %963 = vrot.lane.b32.xlu0 %v2595_v30, %s2446_s24 }
 0x102   : > { %v3301_v23 = vpop.permute.xlu1 %619 }
 0x103   : > { %4381 = vst [vmem:[#allocation12_spill] sm:$0xff] %v3301_v23  ;;  %v3303_v36 = vpop.permute.xlu0 %617 }
 0x104   : > { %4382 = vst [vmem:[#allocation77_spill] sm:$0xff] %v3303_v36  ;;  %1059 = vrot.lane.b32.xlu1 %v4383_v24, %s2447_s27 }
 0x105   : > { %773 = vrot.lane.b32.xlu0 %v4380_v14, %s2444_s5 }
 0x106   : > { %v3309_v32 = vpop.permute.xlu1 %623 }
 0x107   : > { %4384 = vst [vmem:[#allocation11_spill] sm:$0xff] %v3309_v32  ;;  %v3311_v6 = vpop.permute.xlu0 %621 }
 0x108   : > { %4385 = vst [vmem:[#allocation78_spill] sm:$0xff] %v3311_v6  ;;  %775 = vrot.lane.b32.xlu1 %v4383_v24, %s2444_s5 }
 0x109   : > { %1153 = vrot.lane.b32.xlu0 %v2927_v31, %s2448_s29 }
 0x10a   : > { %v3317_v30 = vpop.permute.xlu1 %627 }
 0x10b   : > { %4386 = vst [vmem:[#allocation79_spill] sm:$0xff] %v3317_v30  ;;  %v3319_v23 = vpop.permute.xlu0 %625 }
 0x10c   : > { %4387 = vst [vmem:[#allocation80_spill] sm:$0xff] %v3319_v23  ;;  %1155 = vrot.lane.b32.xlu1 %v2922_v60, %s2448_s29  ;;  %v4390_v23 = vld [vmem:[#allocation14_spill] sm:$0xff] }
 0x10d   : > { %869 = vrot.lane.b32.xlu0 %v2927_v31, %s2445_s8 }
 0x10e   : > { %v3325_v14 = vpop.permute.xlu1 %631 }
 0x10f   : > { %4388 = vst [vmem:[#allocation81_spill] sm:$0xff] %v3325_v14  ;;  %v3327_v32 = vpop.permute.xlu0 %629 }
 0x110   : > { %4389 = vst [vmem:[#allocation82_spill] sm:$0xff] %v3327_v32  ;;  %965 = vrot.lane.b32.xlu1 %v2623_v40, %s2446_s24  ;;  %v4391_v32 = vld [vmem:[#allocation13_spill] sm:$0xff] }
 0x111   : > { %871 = vrot.lane.b32.xlu0 %v2922_v60, %s2445_s8 }
 0x112   : > { %v3333_v24 = vpop.permute.xlu1 %667 }
 0x113   : > { %v3335_v30 = vpop.permute.xlu0 %665 }
 0x114   : > { %1061 = vrot.lane.b32.xlu1 %v4390_v23, %s2447_s27 }
 0x115   : > { %967 = vrot.lane.b32.xlu0 %v2617_v38, %s2446_s24 }
 0x116   : > { %v3341_v31 = vpop.permute.xlu1 %671 }
 0x117   : > { %v3343_v14 = vpop.permute.xlu0 %669 }
 0x118   : > { %1063 = vrot.lane.b32.xlu1 %v4391_v32, %s2447_s27 }
 0x119   : > { %777 = vrot.lane.b32.xlu0 %v4390_v23, %s2444_s5 }
 0x11a   : > { %v3349_v40 = vpop.permute.xlu1 %675 }
 0x11b   : > { %v3351_v60 = vpop.permute.xlu0 %673 }
 0x11c   : > { %779 = vrot.lane.b32.xlu1 %v4391_v32, %s2444_s5 }
 0x11d   : > { %1157 = vrot.lane.b32.xlu0 %v2940_v39, %s2448_s29 }
 0x11e   : > { %v3357_v38 = vpop.permute.xlu1 %679 }
 0x11f   : > { %v3359_v6 = vpop.permute.xlu0 %677 }
 0x120   : > { %1159 = vrot.lane.b32.xlu1 %v2935_v20, %s2448_s29 }
 0x121   : > { %873 = vrot.lane.b32.xlu0 %v2940_v39, %s2445_s8 }
 0x122   : > { %v3365_v23 = vpop.permute.xlu1 %683 }
 0x123   : > { %v3367_v36 = vpop.permute.xlu0 %681 }
 0x124   : > { %969 = vrot.lane.b32.xlu1 %v2645_v48, %s2446_s24 }
 0x125   : > { %875 = vrot.lane.b32.xlu0 %v2935_v20, %s2445_s8 }
 0x126   : > { %v3373_v32 = vpop.permute.xlu1 %687 }
 0x127   : > { %4392 = vst [vmem:[#allocation14_spill] sm:$0xff] %v3373_v32  ;;  %v3375_v1 = vpop.permute.xlu0 %685 }
 0x128   : > { %1065 = vrot.lane.b32.xlu1 %v4393_v22, %s2447_s27 }
 0x129   : > { %971 = vrot.lane.b32.xlu0 %v2639_v46, %s2446_s24 }
 0x12a   : > { %v3381_v39 = vpop.permute.xlu1 %691 }
 0x12b   : > { %4394 = vst [vmem:[#allocation13_spill] sm:$0xff] %v3381_v39  ;;  %v3383_v43 = vpop.permute.xlu0 %689 }
 0x12c   : > { %4395 = vst [vmem:[#allocation16_spill] sm:$0xff] %v3383_v43  ;;  %1067 = vrot.lane.b32.xlu1 %v4396_v2, %s2447_s27 }
 0x12d   : > { %781 = vrot.lane.b32.xlu0 %v4393_v22, %s2444_s5 }
 0x12e   : > { %v3389_v48 = vpop.permute.xlu1 %695 }
 0x12f   : > { %4397 = vst [vmem:[#allocation15_spill] sm:$0xff] %v3389_v48  ;;  %v3391_v20 = vpop.permute.xlu0 %693 }
 0x130   : > { %4398 = vst [vmem:[#allocation83_spill] sm:$0xff] %v3391_v20  ;;  %783 = vrot.lane.b32.xlu1 %v4396_v2, %s2444_s5 }
 0x131   : > { %1161 = vrot.lane.b32.xlu0 %v2953_v47, %s2448_s29 }
 0x132   : > { %v3397_v46 = vpop.permute.xlu1 %699 }
 0x133   : > { %4399 = vst [vmem:[#allocation84_spill] sm:$0xff] %v3397_v46  ;;  %v3399_v39 = vpop.permute.xlu0 %697 }
 0x134   : > { %4400 = vst [vmem:[#allocation85_spill] sm:$0xff] %v3399_v39  ;;  %1163 = vrot.lane.b32.xlu1 %v4401_v25, %s2448_s29  ;;  %v4406_v39 = vld [vmem:[#allocation18_spill] sm:$0xff] }
 0x135   : > { %877 = vrot.lane.b32.xlu0 %v2953_v47, %s2445_s8 }
 0x136   : > { %v3405_v22 = vpop.permute.xlu1 %703 }
 0x137   : > { %4402 = vst [vmem:[#allocation35_spill] sm:$0xff] %v3405_v22  ;;  %v3407_v48 = vpop.permute.xlu0 %701 }
 0x138   : > { %4403 = vst [vmem:[#allocation86_spill] sm:$0xff] %v3407_v48  ;;  %973 = vrot.lane.b32.xlu1 %v2667_v56, %s2446_s24  ;;  %v4408_v48 = vld [vmem:[#allocation17_spill] sm:$0xff] }
 0x139   : > { %879 = vrot.lane.b32.xlu0 %v4401_v25, %s2445_s8 }
 0x13a   : > { %v3413_v2 = vpop.permute.xlu1 %707 }
 0x13b   : > { %4404 = vst [vmem:[#allocation87_spill] sm:$0xff] %v3413_v2  ;;  %v3415_v46 = vpop.permute.xlu0 %705 }
 0x13c   : > { %4405 = vst [vmem:[#allocation88_spill] sm:$0xff] %v3415_v46  ;;  %1069 = vrot.lane.b32.xlu1 %v4406_v39, %s2447_s27 }
 0x13d   : > { %975 = vrot.lane.b32.xlu0 %v2661_v54, %s2446_s24  ;;  %v4409_v54 = vld [vmem:[#allocation36_spill] sm:$0xff] }
 0x13e   : > { %v762_v47 = vpop.permute.xlu1 %761 }
 0x13f   : > { %v3421_v22 = vpop.permute.xlu0 %709 }
 0x140   : > { %4407 = vst [vmem:[#allocation18_spill] sm:$0xff] %v3421_v22  ;;  %1071 = vrot.lane.b32.xlu1 %v4408_v48, %s2447_s27 }
 0x141   : > { %785 = vrot.lane.b32.xlu0 %v4406_v39, %s2444_s5 }
 0x142   : > { %v858_v56 = vpop.permute.xlu1 %857 }
 0x143   : > { %v764_v25 = vpop.permute.xlu0 %763 }
 0x144   : > { %787 = vrot.lane.b32.xlu1 %v4408_v48, %s2444_s5  ;;  %v4410_v48 = vld [vmem:[#allocation8_spill] sm:$0xff] }
 0x145   : > { %1165 = vrot.lane.b32.xlu0 %v2966_v55, %s2448_s29  ;;  %v1242_v20 = vsel %vm1241_vm3, %v4410_v48, %v3049_v21  ;;  %v4412_v48 = vld [vmem:[#allocation20_spill] sm:$0xff] }
 0x146   : > { %v954_v2 = vpop.permute.xlu1 %953  ;;  %v1275_v43 = vsel %vm1274_vm4, %v1242_v20, %v3201_v10 }
 0x147   : > { %v860_v46 = vpop.permute.xlu0 %859  ;;  %v1308_v41 = vsel %vm1307_vm5, %v1275_v43, %v3335_v30 }
 0x148   : > { %1167 = vrot.lane.b32.xlu1 %v4409_v54, %s2448_s29  ;;  %v1341_v21 = vsel %vm1340_vm6, %v1308_v41, %v762_v47 }
 0x149   : > { %881 = vrot.lane.b32.xlu0 %v2966_v55, %s2445_s8  ;;  %v1374_v20 = vsel %vm1373_vm7, %v1341_v21, %v858_v56 }
 0x14a   : > { %v1050_v22 = vpop.permute.xlu1 %1049 }
 0x14b   : > { %v956_v39 = vpop.permute.xlu0 %955 }
 0x14c   : > { %977 = vrot.lane.b32.xlu1 %v2689_v3, %s2446_s24  ;;  %v4411_v3 = vld [vmem:[#allocation9_spill] sm:$0xff] }
 0x14d   : > { %883 = vrot.lane.b32.xlu0 %v4409_v54, %s2445_s8  ;;  %v1243_v32 = vsel %vm1241_vm3, %v4411_v3, %v3066_v51  ;;  %v1407_v51 = vsel %vm1406_vm8, %v1374_v20, %v954_v2  ;;  %v4414_v3 = vld [vmem:[#allocation37_spill] sm:$0xff] }
 0x14e   : > { %v1052_v55 = vpop.permute.xlu1 %1051  ;;  %v1276_v10 = vsel %vm1274_vm4, %v1243_v32, %v3199_v53  ;;  %v1440_v47 = vsel %vm1439_vm9, %v1407_v51, %v1050_v22  ;;  %v4413_v32 = vld [vmem:[#allocation19_spill] sm:$0xff] }
 0x14f   : > { %v766_v61 = vpop.permute.xlu0 %765  ;;  %v1309_v43 = vsel %vm1307_vm5, %v1276_v10, %v3333_v24 }
 0x150   : > { %1073 = vrot.lane.b32.xlu1 %v4412_v48, %s2447_s27  ;;  %v1342_v41 = vsel %vm1340_vm6, %v1309_v43, %v764_v25 }
 0x151   : > { %979 = vrot.lane.b32.xlu0 %v2683_v62, %s2446_s24  ;;  %v1375_v53 = vsel %vm1373_vm7, %v1342_v41, %v860_v46  ;;  %v2320_v41 = vld [vmem:[%s2524_s28 + $0x20] sm:$0xff] }
 0x152   : > { %v768_v30 = vpop.permute.xlu1 %767  ;;  %v1408_v56 = vsel %vm1406_vm8, %v1375_v53, %v956_v39 }
 0x153   : > { %v1146_v54 = vpop.permute.xlu0 %1145  ;;  %v1441_v24 = vsel %vm1439_vm9, %v1408_v56, %v1052_v55 }
 0x154   : > { %1075 = vrot.lane.b32.xlu1 %v4413_v32, %s2447_s27  ;;  %v1473_v62 = vsel %vm1472_vm10, %v1440_v47, %v1146_v54  ;;  %v1245_v47 = vsel %vm1241_vm3, %v2320_v41, %v3060_v26  ;;  %v4415_v54 = vld [vmem:[#allocation22_spill] sm:$0xff] }
 0x155   : > { %789 = vrot.lane.b32.xlu0 %v4412_v48, %s2444_s5  ;;  %2208 = vmatprep.mubr.msk.f32.mxu0 %vm1505_vm11, %v1473_v62  ;;  %v2319_v48 = vld [vmem:[%s2524_s28 + $0x18] sm:$0xff] }
 0x156   : > { %v1148_v2 = vpop.permute.xlu1 %1147  ;;  %v1244_v10 = vsel %vm1241_vm3, %v2319_v48, %v3043_v49  ;;  %v1278_v49 = vsel %vm1274_vm4, %v1245_v47, %v3213_v5  ;;  %v4418_v47 = vld [vmem:[#allocation24_spill] sm:$0xff] }
 0x157   : > { %v1474_v22 = vsel %vm1472_vm10, %v1441_v24, %v1148_v2  ;;  %v862_v25 = vpop.permute.xlu0 %861  ;;  %v1277_v20 = vsel %vm1274_vm4, %v1244_v10, %v3215_v0  ;;  %v1311_v0 = vsel %vm1307_vm5, %v1278_v49, %v3341_v31  ;;  %v4416_v24 = vld [vmem:[#allocation21_spill] sm:$0xff] }
 0x158   : > { %791 = vrot.lane.b32.xlu1 %v4413_v32, %s2444_s5  ;;  %2209 = vmatmul.mubr.msk.f32.vlgmr.msra.gmra.mxu0 %vm1505_vm11, %v1474_v22  ;;  %v1310_v51 = vsel %vm1307_vm5, %v1277_v20, %v3343_v14  ;;  %v1344_v26 = vsel %vm1340_vm6, %v1311_v0, %v768_v30  ;;  %v4419_v0 = vld [vmem:[#allocation23_spill] sm:$0xff] }
 0x159   : > { %1169 = vrot.lane.b32.xlu0 %v2979_v63, %s2448_s29 }
 0x15a   : > { %v958_v46 = vpop.permute.xlu1 %957 }
 0x15b   : > { %v864_v39 = vpop.permute.xlu0 %863 }
 0x15c   : > { %1171 = vrot.lane.b32.xlu1 %v4414_v3, %s2448_s29  ;;  %v1377_v56 = vsel %vm1373_vm7, %v1344_v26, %v864_v39  ;;  %v4417_v39 = vld [vmem:[#allocation38_spill] sm:$0xff] }
 0x15d   : > { %885 = vrot.lane.b32.xlu0 %v2979_v63, %s2445_s8 }
 0x15e   : > { %v1054_v55 = vpop.permute.xlu1 %1053 }
 0x15f   : > { %v960_v21 = vpop.permute.xlu0 %959 }
 0x160   : > { %981 = vrot.lane.b32.xlu1 %v2711_v19, %s2446_s24  ;;  %v1343_v19 = vsel %vm1340_vm6, %v1310_v51, %v766_v61  ;;  %v2322_v51 = vld [vmem:[%s2524_s28 + $0x38] sm:$0xff] }
 0x161   : > { %887 = vrot.lane.b32.xlu0 %v4414_v3, %s2445_s8  ;;  %v1376_v53 = vsel %vm1373_vm7, %v1343_v19, %v862_v25  ;;  %v1247_v41 = vsel %vm1241_vm3, %v2322_v51, %v3075_v52 }
 0x162   : > { %v1056_v43 = vpop.permute.xlu1 %1055  ;;  %v1409_v14 = vsel %vm1406_vm8, %v1376_v53, %v958_v46 }
 0x163   : > { %v770_v63 = vpop.permute.xlu0 %769  ;;  %v1442_v61 = vsel %vm1439_vm9, %v1409_v14, %v1054_v55 }
 0x164   : > { %1077 = vrot.lane.b32.xlu1 %v4415_v54, %s2447_s27 }
 0x165   : > { %983 = vrot.lane.b32.xlu0 %v2705_v16, %s2446_s24  ;;  %v1410_v16 = vsel %vm1406_vm8, %v1377_v56, %v960_v21  ;;  %v2321_v21 = vld [vmem:[%s2524_s28 + $0x30] sm:$0xff] }
 0x166   : > { %v772_v32 = vpop.permute.xlu1 %771  ;;  %v1443_v31 = vsel %vm1439_vm9, %v1410_v16, %v1056_v43  ;;  %v1246_v48 = vsel %vm1241_vm3, %v2321_v21, %v3080_v7  ;;  %v1280_v7 = vsel %vm1274_vm4, %v1247_v41, %v3221_v15 }
 0x167   : > { %v1150_v62 = vpop.permute.xlu0 %1149  ;;  %v1279_v10 = vsel %vm1274_vm4, %v1246_v48, %v3223_v9  ;;  %v1313_v9 = vsel %vm1307_vm5, %v1280_v7, %v3349_v40 }
 0x168   : > { %v1475_v5 = vsel %vm1472_vm10, %v1442_v61, %v1150_v62  ;;  %1079 = vrot.lane.b32.xlu1 %v4416_v24, %s2447_s27  ;;  %v1312_v43 = vsel %vm1307_vm5, %v1279_v10, %v3351_v60  ;;  %v1346_v52 = vsel %vm1340_vm6, %v1313_v9, %v772_v32  ;;  %v4421_v10 = vld [vmem:[#allocation25_spill] sm:$0xff]  ;;  %v3623_v9 = vld [vmem:[%s2524_s28 + $0x120] sm:$0xff] }
 0x169   : > { %793 = vrot.lane.b32.xlu0 %v4415_v54, %s2444_s5  ;;  %2211 = vmatprep.mubr.msk.f32.mxu0 %vm1505_vm11, %v1475_v5 }
 0x16a   : > { %v1152_v30 = vpop.permute.xlu1 %1151 }
 0x16b   : > { %v1476_v2 = vsel %vm1472_vm10, %v1443_v31, %v1152_v30  ;;  %v866_v22 = vpop.permute.xlu0 %865 }
 0x16c   : > { %795 = vrot.lane.b32.xlu1 %v4416_v24, %s2444_s5  ;;  %2212 = vmatmul.mubr.msk.f32.gmra.mxu0 %vm1505_vm11, %v1476_v2  ;;  %v2323_v24 = vld [vmem:[%s2524_s28 + $0x48] sm:$0xff] }
 0x16d   : > { %1173 = vrot.lane.b32.xlu0 %v2992_v18, %s2448_s29  ;;  %v1248_v16 = vsel %vm1241_vm3, %v2323_v24, %v3088_v13 }
 0x16e   : > { %v962_v25 = vpop.permute.xlu1 %961  ;;  %v1281_v31 = vsel %vm1274_vm4, %v1248_v16, %v3231_v42  ;;  %v3594_v42 = vld [vmem:[%s2524_s28 + $0x110] sm:$0xff] }
 0x16f   : > { %v868_v46 = vpop.permute.xlu0 %867 }
 0x170   : > { %1175 = vrot.lane.b32.xlu1 %v4417_v39, %s2448_s29  ;;  %v1379_v53 = vsel %vm1373_vm7, %v1346_v52, %v868_v46  ;;  %v4420_v46 = vld [vmem:[#allocation26_spill] sm:$0xff] }
 0x171   : > { %889 = vrot.lane.b32.xlu0 %v2992_v18, %s2445_s8 }
 0x172   : > { %v1058_v3 = vpop.permute.xlu1 %1057 }
 0x173   : > { %v964_v55 = vpop.permute.xlu0 %963 }
 0x174   : > { %985 = vrot.lane.b32.xlu1 %v2733_v37, %s2446_s24  ;;  %v1345_v37 = vsel %vm1340_vm6, %v1312_v43, %v770_v63 }
 0x175   : > { %891 = vrot.lane.b32.xlu0 %v4417_v39, %s2445_s8  ;;  %v1378_v19 = vsel %vm1373_vm7, %v1345_v37, %v866_v22  ;;  %v2324_v22 = vld [vmem:[%s2524_s28 + $0x50] sm:$0xff] }
 0x176   : > { %v1060_v20 = vpop.permute.xlu1 %1059  ;;  %v1411_v60 = vsel %vm1406_vm8, %v1378_v19, %v962_v25  ;;  %v1249_v25 = vsel %vm1241_vm3, %v2324_v22, %v3086_v8 }
 0x177   : > { %v774_v18 = vpop.permute.xlu0 %773  ;;  %v1444_v63 = vsel %vm1439_vm9, %v1411_v60, %v1058_v3  ;;  %v2327_v60 = vld [vmem:[%s2524_s28 + $0x60] sm:$0xff] }
 0x178   : > { %1081 = vrot.lane.b32.xlu1 %v4418_v47, %s2447_s27 }
 0x179   : > { %987 = vrot.lane.b32.xlu0 %v2727_v34, %s2446_s24  ;;  %v1412_v34 = vsel %vm1406_vm8, %v1379_v53, %v964_v55  ;;  %v2328_v53 = vld [vmem:[%s2524_s28 + $0x68] sm:$0xff] }
 0x17a   : > { %v776_v54 = vpop.permute.xlu1 %775  ;;  %v1445_v40 = vsel %vm1439_vm9, %v1412_v34, %v1060_v20  ;;  %v4423_v34 = vld [vmem:[#allocation28_spill] sm:$0xff] }
 0x17b   : > { %v1154_v49 = vpop.permute.xlu0 %1153 }
 0x17c   : > { %v1477_v15 = vsel %vm1472_vm10, %v1444_v63, %v1154_v49  ;;  %1083 = vrot.lane.b32.xlu1 %v4419_v0, %s2447_s27 }
 0x17d   : > { %797 = vrot.lane.b32.xlu0 %v4418_v47, %s2444_s5  ;;  %2214 = vmatprep.mubr.msk.f32.mxu0 %vm1505_vm11, %v1477_v15  ;;  %v4422_v47 = vld [vmem:[#allocation39_spill] sm:$0xff]  ;;  %v1251_v15 = vsel %vm1241_vm3, %v2328_v53, %v3094_v57 }
 0x17e   : > { %v1156_v14 = vpop.permute.xlu1 %1155  ;;  %v4430_v53 = vld [vmem:[#allocation67_spill] sm:$0xff] }
 0x17f   : > { %v1478_v32 = vsel %vm1472_vm10, %v1445_v40, %v1156_v14  ;;  %v870_v26 = vpop.permute.xlu0 %869 }
 0x180   : > { %799 = vrot.lane.b32.xlu1 %v4419_v0, %s2444_s5  ;;  %2215 = vmatmul.mubr.msk.f32.gmra.mxu0 %vm1505_vm11, %v1478_v32 }
 0x181   : > { %1177 = vrot.lane.b32.xlu0 %v3005_v35, %s2448_s29 }
 0x182   : > { %v966_v61 = vpop.permute.xlu1 %965 }
 0x183   : > { %v872_v62 = vpop.permute.xlu0 %871 }
 0x184   : > { %1179 = vrot.lane.b32.xlu1 %v3000_v44, %s2448_s29 }
 0x185   : > { %893 = vrot.lane.b32.xlu0 %v3005_v35, %s2445_s8  ;;  %v1314_v35 = vsel %vm1307_vm5, %v1281_v31, %v3359_v6  ;;  %v4424_v31 = vld [vmem:[#allocation27_spill] sm:$0xff] }
 0x186   : > { %v1062_v56 = vpop.permute.xlu1 %1061 }
 0x187   : > { %v968_v5 = vpop.permute.xlu0 %967 }
 0x188   : > { %989 = vrot.lane.b32.xlu1 %v2755_v59, %s2446_s24  ;;  %v1347_v59 = vsel %vm1340_vm6, %v1314_v35, %v774_v18 }
 0x189   : > { %895 = vrot.lane.b32.xlu0 %v3000_v44, %s2445_s8  ;;  %v1282_v44 = vsel %vm1274_vm4, %v1249_v25, %v3229_v12  ;;  %v1380_v13 = vsel %vm1373_vm7, %v1347_v59, %v870_v26  ;;  %v2330_v25 = vld [vmem:[%s2524_s28 + $0x78] sm:$0xff] }
 0x18a   : > { %v1064_v30 = vpop.permute.xlu1 %1063  ;;  %v1315_v6 = vsel %vm1307_vm5, %v1282_v44, %v3357_v38  ;;  %v1413_v8 = vsel %vm1406_vm8, %v1380_v13, %v966_v61  ;;  %v1252_v59 = vsel %vm1241_vm3, %v2330_v25, %v3104_v27 }
 0x18b   : > { %v778_v2 = vpop.permute.xlu0 %777  ;;  %v1348_v3 = vsel %vm1340_vm6, %v1315_v6, %v776_v54  ;;  %v1446_v55 = vsel %vm1439_vm9, %v1413_v8, %v1062_v56  ;;  %v1250_v54 = vsel %vm1241_vm3, %v2327_v60, %v3096_v45  ;;  %v1284_v45 = vsel %vm1274_vm4, %v1251_v15, %v3237_v11  ;;  %v2331_v6 = vld [vmem:[%s2524_s28 + $0x80] sm:$0xff]  ;;  %v4428_v60 = vld [vmem:[#allocation29_spill] sm:$0xff] }
 0x18c   : > { %1085 = vrot.lane.b32.xlu1 %v4420_v46, %s2447_s27  ;;  %v1381_v12 = vsel %vm1373_vm7, %v1348_v3, %v872_v62  ;;  %v1283_v52 = vsel %vm1274_vm4, %v1250_v54, %v3239_v33  ;;  %v3646_v33 = vld [vmem:[%s2524_s28 + $0x128] sm:$0xff]  ;;  %v1253_v8 = vsel %vm1241_vm3, %v2331_v6, %v3102_v50  ;;  %v3690_v3 = vld [vmem:[%s2524_s28 + $0x138] sm:$0xff] }
 0x18d   : > { %991 = vrot.lane.b32.xlu0 %v3594_v42, %s2446_s24  ;;  %v1414_v20 = vsel %vm1406_vm8, %v1381_v12, %v968_v5  ;;  %v3770_v6 = vld [vmem:[%s2524_s28 + $0x158] sm:$0xff] }
 0x18e   : > { %v780_v39 = vpop.permute.xlu1 %779  ;;  %v1447_v38 = vsel %vm1439_vm9, %v1414_v20, %v1064_v30  ;;  %v4426_v20 = vld [vmem:[#allocation30_spill] sm:$0xff] }
 0x18f   : > { %v1158_v21 = vpop.permute.xlu0 %1157 }
 0x190   : > { %v1479_v48 = vsel %vm1472_vm10, %v1446_v55, %v1158_v21  ;;  %1087 = vrot.lane.b32.xlu1 %v4421_v10, %s2447_s27 }
 0x191   : > { %801 = vrot.lane.b32.xlu0 %v4420_v46, %s2444_s5  ;;  %2217 = vmatprep.mubr.msk.f32.mxu0 %vm1505_vm11, %v1479_v48  ;;  %v1285_v46 = vsel %vm1274_vm4, %v1252_v59, %v3247_v17  ;;  %v4425_v17 = vld [vmem:[#allocation14_spill] sm:$0xff] }
 0x192   : > { %v1160_v43 = vpop.permute.xlu1 %1159 }
 0x193   : > { %v1480_v18 = vsel %vm1472_vm10, %v1447_v38, %v1160_v43  ;;  %v874_v51 = vpop.permute.xlu0 %873  ;;  %v3710_v43 = vld [vmem:[%s2524_s28 + $0x140] sm:$0xff] }
 0x194   : > { %803 = vrot.lane.b32.xlu1 %v4421_v10, %s2444_s5  ;;  %2218 = vmatmul.mubr.msk.f32.gmra.mxu0 %vm1505_vm11, %v1480_v18 }
 0x195   : > { %1181 = vrot.lane.b32.xlu0 %v3018_v58, %s2448_s29 }
 0x196   : > { %v970_v41 = vpop.permute.xlu1 %969 }
 0x197   : > { %v876_v37 = vpop.permute.xlu0 %875 }
 0x198   : > { %1183 = vrot.lane.b32.xlu1 %v4422_v47, %s2448_s29 }
 0x199   : > { %897 = vrot.lane.b32.xlu0 %v3018_v58, %s2445_s8  ;;  %v1316_v58 = vsel %vm1307_vm5, %v1283_v52, %v3367_v36  ;;  %v1317_v36 = vsel %vm1307_vm5, %v1284_v45, %v3365_v23 }
 0x19a   : > { %v1066_v7 = vpop.permute.xlu1 %1065  ;;  %v1349_v0 = vsel %vm1340_vm6, %v1316_v58, %v778_v2  ;;  %v1350_v32 = vsel %vm1340_vm6, %v1317_v36, %v780_v39  ;;  %v4429_v58 = vld [vmem:[#allocation47_spill] sm:$0xff] }
 0x19b   : > { %v972_v19 = vpop.permute.xlu0 %971  ;;  %v1382_v40 = vsel %vm1373_vm7, %v1349_v0, %v874_v51  ;;  %v1383_v11 = vsel %vm1373_vm7, %v1350_v32, %v876_v37  ;;  %v2335_v36 = vld [vmem:[%s2524_s28 + $0x98] sm:$0xff] }
 0x19c   : > { %993 = vrot.lane.b32.xlu1 %v3623_v9, %s2446_s24  ;;  %v1415_v57 = vsel %vm1406_vm8, %v1382_v40, %v970_v41  ;;  %v1416_v56 = vsel %vm1406_vm8, %v1383_v11, %v972_v19  ;;  %v4427_v19 = vld [vmem:[#allocation41_spill] sm:$0xff] }
 0x19d   : > { %899 = vrot.lane.b32.xlu0 %v4422_v47, %s2445_s8  ;;  %v1448_v26 = vsel %vm1439_vm9, %v1415_v57, %v1066_v7  ;;  %v4432_v57 = vld [vmem:[#allocation46_spill] sm:$0xff] }
 0x19e   : > { %v1068_v63 = vpop.permute.xlu1 %1067 }
 0x19f   : > { %v782_v49 = vpop.permute.xlu0 %781  ;;  %v1449_v23 = vsel %vm1439_vm9, %v1416_v56, %v1068_v63  ;;  %v2334_v63 = vld [vmem:[%s2524_s28 + $0x90] sm:$0xff] }
 0x1a0   : > { %1089 = vrot.lane.b32.xlu1 %v4423_v34, %s2447_s27  ;;  %v4435_v56 = vld [vmem:[#allocation13_spill] sm:$0xff] }
 0x1a1   : > { %995 = vrot.lane.b32.xlu0 %v3646_v33, %s2446_s24 }
 0x1a2   : > { %v784_v14 = vpop.permute.xlu1 %783 }
 0x1a3   : > { %v1162_v61 = vpop.permute.xlu0 %1161 }
 0x1a4   : > { %v1481_v62 = vsel %vm1472_vm10, %v1448_v26, %v1162_v61  ;;  %805 = vrot.lane.b32.xlu1 %v4423_v34, %s2444_s5  ;;  %v4431_v34 = vld [vmem:[#allocation16_spill] sm:$0xff]  ;;  %v4434_v61 = vld [vmem:[#allocation66_spill] sm:$0xff] }
 0x1a5   : > { %711 = vrot.lane.b32.xlu0 %v3646_v33, %s2443_s4  ;;  %2220 = vmatprep.mubr.msk.f32.mxu0 %vm1505_vm11, %v1481_v62  ;;  %v4433_v26 = vld [vmem:[#allocation40_spill] sm:$0xff] }
 0x1a6   : > { %v1164_v5 = vpop.permute.xlu1 %1163 }
 0x1a7   : > { %v1482_v24 = vsel %vm1472_vm10, %v1449_v23, %v1164_v5  ;;  %v878_v16 = vpop.permute.xlu0 %877 }
 0x1a8   : > { %1185 = vrot.lane.b32.xlu1 %v3031_v29, %s2448_s29  ;;  %2221 = vmatmul.mubr.msk.f32.gmra.mxu0 %vm1505_vm11, %v1482_v24 }
 0x1a9   : > { %1091 = vrot.lane.b32.xlu0 %v4424_v31, %s2447_s27 }
 0x1aa   : > { %v974_v30 = vpop.permute.xlu1 %973 }
 0x1ab   : > { %v880_v35 = vpop.permute.xlu0 %879 }
 0x1ac   : > { %901 = vrot.lane.b32.xlu1 %v3031_v29, %s2445_s8  ;;  %v1318_v29 = vsel %vm1307_vm5, %v1285_v46, %v3375_v1 }
 0x1ad   : > { %807 = vrot.lane.b32.xlu0 %v4424_v31, %s2444_s5  ;;  %v1351_v39 = vsel %vm1340_vm6, %v1318_v29, %v782_v49  ;;  %v1254_v49 = vsel %vm1241_vm3, %v2334_v63, %v4429_v58 }
 0x1ae   : > { %v1070_v2 = vpop.permute.xlu1 %1069  ;;  %v1384_v27 = vsel %vm1373_vm7, %v1351_v39, %v878_v16  ;;  %v1287_v15 = vsel %vm1274_vm4, %v1254_v49, %v4430_v53 }
 0x1af   : > { %v976_v22 = vpop.permute.xlu0 %975  ;;  %v1417_v50 = vsel %vm1406_vm8, %v1384_v27, %v974_v30  ;;  %v1320_v45 = vsel %vm1307_vm5, %v1287_v15, %v4431_v34  ;;  %v4445_v34 = vld [vmem:[#allocation42_spill] sm:$0xff] }
 0x1b0   : > { %903 = vrot.lane.b32.xlu1 %v3026_v4, %s2445_s8  ;;  %v1450_v12 = vsel %vm1439_vm9, %v1417_v50, %v1070_v2  ;;  %v4438_v50 = vld [vmem:[#allocation49_spill] sm:$0xff] }
 0x1b1   : > { %1187 = vrot.lane.b32.xlu0 %v3026_v4, %s2448_s29  ;;  %v1286_v4 = vsel %vm1274_vm4, %v1253_v8, %v3245_v28 }
 0x1b2   : > { %v1072_v44 = vpop.permute.xlu1 %1071  ;;  %v1319_v1 = vsel %vm1307_vm5, %v1286_v4, %v4425_v17  ;;  %v4437_v17 = vld [vmem:[#allocation43_spill] sm:$0xff] }
 0x1b3   : > { %v786_v13 = vpop.permute.xlu0 %785  ;;  %v1352_v21 = vsel %vm1340_vm6, %v1319_v1, %v784_v14  ;;  %v1255_v14 = vsel %vm1241_vm3, %v2335_v36, %v4432_v57  ;;  %v2338_v1 = vld [vmem:[%s2524_s28 + $0xa8] sm:$0xff] }
 0x1b4   : > { %713 = vrot.lane.b32.xlu1 %v3690_v3, %s2443_s4  ;;  %v1385_v10 = vsel %vm1373_vm7, %v1352_v21, %v880_v35  ;;  %v1353_v32 = vsel %vm1340_vm6, %v1320_v45, %v786_v13  ;;  %v1288_v11 = vsel %vm1274_vm4, %v1255_v14, %v4434_v61  ;;  %v4436_v13 = vld [vmem:[#allocation32_spill] sm:$0xff]  ;;  %v4439_v21 = vld [vmem:[#allocation31_spill] sm:$0xff] }
 0x1b5   : > { %997 = vrot.lane.b32.xlu0 %v3690_v3, %s2446_s24  ;;  %v1418_v38 = vsel %vm1406_vm8, %v1385_v10, %v976_v22  ;;  %v1321_v23 = vsel %vm1307_vm5, %v1288_v11, %v4435_v56  ;;  %v3756_v22 = vld [vmem:[%s2524_s28 + $0x150] sm:$0xff] }
 0x1b6   : > { %v788_v55 = vpop.permute.xlu1 %787  ;;  %v1451_v18 = vsel %vm1439_vm9, %v1418_v38, %v1072_v44  ;;  %v4446_v11 = vld [vmem:[#allocation34_spill] sm:$0xff] }
 0x1b7   : > { %v1166_v48 = vpop.permute.xlu0 %1165  ;;  %v1354_v16 = vsel %vm1340_vm6, %v1321_v23, %v788_v55  ;;  %v1256_v55 = vsel %vm1241_vm3, %v2338_v1, %v4438_v50  ;;  %v4454_v1 = vld [vmem:[#allocation84_spill] sm:$0xff] }
 0x1b8   : > { %v1483_v28 = vsel %vm1472_vm10, %v1450_v12, %v1166_v48  ;;  %1093 = vrot.lane.b32.xlu1 %v4426_v20, %s2447_s27  ;;  %v4440_v12 = vld [vmem:[#allocation69_spill] sm:$0xff] }
 0x1b9   : > { %999 = vrot.lane.b32.xlu0 %v3710_v43, %s2446_s24  ;;  %2223 = vmatprep.mubr.msk.f32.mxu0 %vm1505_vm11, %v1483_v28  ;;  %v1289_v48 = vsel %vm1274_vm4, %v1256_v55, %v4440_v12  ;;  %v4441_v28 = vld [vmem:[#allocation83_spill] sm:$0xff] }
 0x1ba   : > { %v1168_v51 = vpop.permute.xlu1 %1167 }
 0x1bb   : > { %v1484_v41 = vsel %vm1472_vm10, %v1451_v18, %v1168_v51  ;;  %v882_v37 = vpop.permute.xlu0 %881  ;;  %v2339_v18 = vld [vmem:[%s2524_s28 + $0xb0] sm:$0xff]  ;;  %v4442_v51 = vld [vmem:[#allocation48_spill] sm:$0xff] }
 0x1bc   : > { %809 = vrot.lane.b32.xlu1 %v4426_v20, %s2444_s5  ;;  %2224 = vmatmul.mubr.msk.f32.gmra.mxu0 %vm1505_vm11, %v1484_v41  ;;  %v1386_v62 = vsel %vm1373_vm7, %v1353_v32, %v882_v37  ;;  %v1322_v20 = vsel %vm1307_vm5, %v1289_v48, %v4441_v28  ;;  %v1257_v41 = vsel %vm1241_vm3, %v2339_v18, %v4442_v51  ;;  %v3816_v32 = vld [vmem:[%s2524_s28 + $0x168] sm:$0xff] }
 0x1bd   : > { %715 = vrot.lane.b32.xlu0 %v3710_v43, %s2443_s4 }
 0x1be   : > { %v978_v47 = vpop.permute.xlu1 %977 }
 0x1bf   : > { %v884_v7 = vpop.permute.xlu0 %883  ;;  %v1419_v5 = vsel %vm1406_vm8, %v1386_v62, %v978_v47  ;;  %v4443_v47 = vld [vmem:[#allocation68_spill] sm:$0xff]  ;;  %v3826_v62 = vld [vmem:[%s2524_s28 + $0x170] sm:$0xff] }
 0x1c0   : > { %1189 = vrot.lane.b32.xlu1 %v4427_v19, %s2448_s29  ;;  %v1387_v35 = vsel %vm1373_vm7, %v1354_v16, %v884_v7  ;;  %v1290_v7 = vsel %vm1274_vm4, %v1257_v41, %v4443_v47  ;;  %v231_v41 = vld [vmem:[%s2524_s28 + $0x180] sm:$0xff] }
 0x1c1   : > { %1095 = vrot.lane.b32.xlu0 %v4428_v60, %s2447_s27 }
 0x1c2   : > { %v1074_v54 = vpop.permute.xlu1 %1073 }
 0x1c3   : > { %v980_v52 = vpop.permute.xlu0 %979  ;;  %v1452_v31 = vsel %vm1439_vm9, %v1419_v5, %v1074_v54  ;;  %v2342_v5 = vld [vmem:[%s2524_s28 + $0xc0] sm:$0xff] }
 0x1c4   : > { %905 = vrot.lane.b32.xlu1 %v4427_v19, %s2445_s8  ;;  %v1420_v25 = vsel %vm1406_vm8, %v1387_v35, %v980_v52 }
 0x1c5   : > { %811 = vrot.lane.b32.xlu0 %v4428_v60, %s2444_s5  ;;  %v4444_v60 = vld [vmem:[#allocation15_spill] sm:$0xff] }
 0x1c6   : > { %v1076_v0 = vpop.permute.xlu1 %1075  ;;  %v1323_v54 = vsel %vm1307_vm5, %v1290_v7, %v4444_v60  ;;  %v450_v60 = vrot.slane %v231_v41, 1 }
 0x1c7   : > { %v790_v40 = vpop.permute.xlu0 %789  ;;  %v1453_v59 = vsel %vm1439_vm9, %v1420_v25, %v1076_v0 }
 0x1c8   : > { %907 = vrot.lane.b32.xlu1 %v4433_v26, %s2445_s8  ;;  %v1355_v37 = vsel %vm1340_vm6, %v1322_v20, %v790_v40 }
 0x1c9   : > { %1191 = vrot.lane.b32.xlu0 %v4433_v26, %s2448_s29 }
 0x1ca   : > { %v792_v24 = vpop.permute.xlu1 %791 }
 0x1cb   : > { %v1170_v30 = vpop.permute.xlu0 %1169  ;;  %v1356_v58 = vsel %vm1340_vm6, %v1323_v54, %v792_v24  ;;  %v4447_v24 = vld [vmem:[#allocation51_spill] sm:$0xff] }
 0x1cc   : > { %v1485_v2 = vsel %vm1472_vm10, %v1452_v31, %v1170_v30  ;;  %717 = vrot.lane.b32.xlu1 %v3756_v22, %s2443_s4  ;;  %v1258_v16 = vsel %vm1241_vm3, %v2342_v5, %v4447_v24  ;;  %v4448_v31 = vld [vmem:[#allocation70_spill] sm:$0xff]  ;;  %v2345_v5 = vld [vmem:[%s2524_s28 + $0xe0] sm:$0xff] }
 0x1cd   : > { %1001 = vrot.lane.b32.xlu0 %v3756_v22, %s2446_s24  ;;  %2226 = vmatprep.mubr.msk.f32.mxu0 %vm1505_vm11, %v1485_v2  ;;  %v1291_v30 = vsel %vm1274_vm4, %v1258_v16, %v4448_v31  ;;  %v4449_v2 = vld [vmem:[#allocation85_spill] sm:$0xff]  ;;  %v4459_v24 = vld [vmem:[#allocation52_spill] sm:$0xff] }
 0x1ce   : > { %v1172_v46 = vpop.permute.xlu1 %1171  ;;  %v1324_v25 = vsel %vm1307_vm5, %v1291_v30, %v4449_v2  ;;  %v1261_v16 = vsel %vm1241_vm3, %v2345_v5, %v4459_v24  ;;  %v4460_v30 = vld [vmem:[#allocation71_spill] sm:$0xff] }
 0x1cf   : > { %v1486_v44 = vsel %vm1472_vm10, %v1453_v59, %v1172_v46  ;;  %v886_v29 = vpop.permute.xlu0 %885  ;;  %v2343_v46 = vld [vmem:[%s2524_s28 + $0xc8] sm:$0xff] }
 0x1d0   : > { %1097 = vrot.lane.b32.xlu1 %v4436_v13, %s2447_s27  ;;  %2227 = vmatmul.mubr.msk.f32.gmra.mxu0 %vm1505_vm11, %v1486_v44  ;;  %v1388_v19 = vsel %vm1373_vm7, %v1355_v37, %v886_v29  ;;  %v4450_v44 = vld [vmem:[#allocation50_spill] sm:$0xff]  ;;  %v232_v37 = vld [vmem:[%s2524_s28 + $0x188] sm:$0xff] }
 0x1d1   : > { %1003 = vrot.lane.b32.xlu0 %v3770_v6, %s2446_s24  ;;  %v1259_v29 = vsel %vm1241_vm3, %v2343_v46, %v4450_v44  ;;  %v451_v54 = vrot.slane %v232_v37, 1  ;;  %v4461_v46 = vld [vmem:[#allocation35_spill] sm:$0xff] }
 0x1d2   : > { %v982_v8 = vpop.permute.xlu1 %981 }
 0x1d3   : > { %v888_v39 = vpop.permute.xlu0 %887  ;;  %v1421_v52 = vsel %vm1406_vm8, %v1388_v19, %v982_v8  ;;  %v4451_v8 = vld [vmem:[#allocation45_spill] sm:$0xff]  ;;  %v4455_v19 = vld [vmem:[#allocation44_spill] sm:$0xff] }
 0x1d4   : > { %813 = vrot.lane.b32.xlu1 %v4436_v13, %s2444_s5  ;;  %v1389_v15 = vsel %vm1373_vm7, %v1356_v58, %v888_v39  ;;  %v4452_v39 = vld [vmem:[#allocation10_spill] sm:$0xff]  ;;  %v452_v58 = vsel %vm285_vm0, %v450_v60, %v451_v54 }
 0x1d5   : > { %719 = vrot.lane.b32.xlu0 %v3770_v6, %s2443_s4  ;;  %v2346_v60 = vld [vmem:[%s2524_s28 + $0xf0] sm:$0xff] }
 0x1d6   : > { %v1078_v4 = vpop.permute.xlu1 %1077 }
 0x1d7   : > { %v984_v27 = vpop.permute.xlu0 %983  ;;  %v1454_v49 = vsel %vm1439_vm9, %v1421_v52, %v1078_v4  ;;  %v1292_v4 = vsel %vm1274_vm4, %v1259_v29, %v4452_v39 }
 0x1d8   : > { %1193 = vrot.lane.b32.xlu1 %v4437_v17, %s2448_s29  ;;  %v1422_v45 = vsel %vm1406_vm8, %v1389_v15, %v984_v27  ;;  %v1325_v50 = vsel %vm1307_vm5, %v1292_v4, %v4454_v1  ;;  %v233_v15 = vld [vmem:[%s2524_s28 + $0x190] sm:$0x3] }
 0x1d9   : > { %1099 = vrot.lane.b32.xlu0 %v4439_v21, %s2447_s27 }
 0x1da   : > { %v1080_v10 = vpop.permute.xlu1 %1079 }
 0x1db   : > { %v794_v38 = vpop.permute.xlu0 %793  ;;  %v1455_v40 = vsel %vm1439_vm9, %v1422_v45, %v1080_v10 }
 0x1dc   : > { %909 = vrot.lane.b32.xlu1 %v4437_v17, %s2445_s8  ;;  %v1357_v13 = vsel %vm1340_vm6, %v1324_v25, %v794_v38  ;;  %v4453_v17 = vld [vmem:[#allocation33_spill] sm:$0xff] }
 0x1dd   : > { %815 = vrot.lane.b32.xlu0 %v4439_v21, %s2444_s5 }
 0x1de   : > { %v796_v63 = vpop.permute.xlu1 %795 }
 0x1df   : > { %v1174_v53 = vpop.permute.xlu0 %1173  ;;  %v1358_v12 = vsel %vm1340_vm6, %v1325_v50, %v796_v63  ;;  %v458_v50 = vrot.slane %v233_v15, 2 }
 0x1e0   : > { %v1487_v0 = vsel %vm1472_vm10, %v1454_v49, %v1174_v53  ;;  %911 = vrot.lane.b32.xlu1 %v4445_v34, %s2445_s8 }
 0x1e1   : > { %1195 = vrot.lane.b32.xlu0 %v4445_v34, %s2448_s29  ;;  %2229 = vmatprep.mubr.msk.f32.mxu0 %vm1505_vm11, %v1487_v0  ;;  %v2344_v0 = vld [vmem:[%s2524_s28 + $0xd8] sm:$0xff]  ;;  %v4456_v34 = vld [vmem:[#allocation53_spill] sm:$0xff] }
 0x1e2   : > { %v1176_v36 = vpop.permute.xlu1 %1175  ;;  %v1260_v45 = vsel %vm1241_vm3, %v2344_v0, %v4456_v34  ;;  %v4464_v0 = vld [vmem:[#allocation88_spill] sm:$0xff] }
 0x1e3   : > { %v1488_v57 = vsel %vm1472_vm10, %v1455_v40, %v1176_v36  ;;  %v890_v14 = vpop.permute.xlu0 %889  ;;  %v455_v40 = vrot.slane %v231_v41, 2  ;;  %v456_v36 = vrot.slane %v232_v37, 2 }
 0x1e4   : > { %721 = vrot.lane.b32.xlu1 %v3816_v32, %s2443_s4  ;;  %2230 = vmatmul.mubr.msk.f32.gmra.mxu0 %vm1505_vm11, %v1488_v57  ;;  %v1390_v27 = vsel %vm1373_vm7, %v1357_v13, %v890_v14  ;;  %v4457_v57 = vld [vmem:[#allocation72_spill] sm:$0xff] }
 0x1e5   : > { %1005 = vrot.lane.b32.xlu0 %v3816_v32, %s2446_s24  ;;  %v1293_v14 = vsel %vm1274_vm4, %v1260_v45, %v4457_v57  ;;  %v457_v25 = vsel %vm366_vm1, %v455_v40, %v456_v36 }
 0x1e6   : > { %v986_v26 = vpop.permute.xlu1 %985 }
 0x1e7   : > { %v892_v61 = vpop.permute.xlu0 %891  ;;  %v1423_v55 = vsel %vm1406_vm8, %v1390_v27, %v986_v26 }
 0x1e8   : > { %1101 = vrot.lane.b32.xlu1 %v4446_v11, %s2447_s27  ;;  %v1391_v28 = vsel %vm1373_vm7, %v1358_v12, %v892_v61  ;;  %v453_v61 = vrot.slane %v233_v15, 1 }
 0x1e9   : > { %1007 = vrot.lane.b32.xlu0 %v3826_v62, %s2446_s24 }
 0x1ea   : > { %v1082_v56 = vpop.permute.xlu1 %1081 }
 0x1eb   : > { %v988_v23 = vpop.permute.xlu0 %987  ;;  %v1456_v48 = vsel %vm1439_vm9, %v1423_v55, %v1082_v56 }
 0x1ec   : > { %817 = vrot.lane.b32.xlu1 %v4446_v11, %s2444_s5  ;;  %v1424_v38 = vsel %vm1406_vm8, %v1391_v28, %v988_v23  ;;  %v4458_v11 = vld [vmem:[#allocation86_spill] sm:$0xff] }
 0x1ed   : > { %723 = vrot.lane.b32.xlu0 %v3826_v62, %s2443_s4  ;;  %v1326_v56 = vsel %vm1307_vm5, %v1293_v14, %v4458_v11 }
 0x1ee   : > { %v1084_v35 = vpop.permute.xlu1 %1083 }
 0x1ef   : > { %v798_v59 = vpop.permute.xlu0 %797  ;;  %v1457_v18 = vsel %vm1439_vm9, %v1424_v38, %v1084_v35  ;;  %v1294_v35 = vsel %vm1274_vm4, %v1261_v16, %v4460_v30  ;;  %v236_v38 = vld [vmem:[%s2524_s28 + $0x1a8] sm:$0x3]  ;;  %v4465_v30 = vld [vmem:[#allocation54_spill] sm:$0xff] }
 0x1f0   : > { %1197 = vrot.lane.b32.xlu1 %v4451_v8, %s2448_s29  ;;  %v1359_v31 = vsel %vm1340_vm6, %v1326_v56, %v798_v59  ;;  %v1327_v44 = vsel %vm1307_vm5, %v1294_v35, %v4461_v46  ;;  %v454_v59 = vsel %vm285_vm0, %v451_v54, %v453_v61  ;;  %v4462_v54 = vld [vmem:[#allocation55_spill] sm:$0xff]  ;;  %v471_v15 = vrot.slane %v236_v38, 2 }
 0x1f1   : > { %1103 = vrot.lane.b32.xlu0 %v4453_v17, %s2447_s27 }
 0x1f2   : > { %v800_v21 = vpop.permute.xlu1 %799 }
 0x1f3   : > { %v1178_v10 = vpop.permute.xlu0 %1177 }
 0x1f4   : > { %913 = vrot.lane.b32.xlu1 %v4451_v8, %s2445_s8  ;;  %v1489_v20 = vsel %vm1472_vm10, %v1456_v48, %v1178_v10  ;;  %v1360_v8 = vsel %vm1340_vm6, %v1327_v44, %v800_v21  ;;  %v459_v10 = vsel %vm366_vm1, %v456_v36, %v458_v50  ;;  %v4467_v44 = vld [vmem:[#allocation87_spill] sm:$0xff] }
 0x1f5   : > { %819 = vrot.lane.b32.xlu0 %v4453_v17, %s2444_s5  ;;  %2232 = vmatprep.mubr.msk.f32.mxu1 %vm1505_vm11, %v1489_v20  ;;  %v235_v20 = vld [vmem:[%s2524_s28 + $0x1a0] sm:$0xff] }
 0x1f6   : > { %v1180_v51 = vpop.permute.xlu1 %1179 }
 0x1f7   : > { %v1490_v47 = vsel %vm1472_vm10, %v1457_v18, %v1180_v51  ;;  %v894_v7 = vpop.permute.xlu0 %893  ;;  %v234_v51 = vld [vmem:[%s2524_s28 + $0x198] sm:$0xff] }
 0x1f8   : > { %915 = vrot.lane.b32.xlu1 %v4455_v19, %s2445_s8  ;;  %2233 = vmatmul.mubr.msk.f32.vlgmr.msra.gmra.mxu1 %vm1505_vm11, %v1490_v47  ;;  %v1392_v2 = vsel %vm1373_vm7, %v1359_v31, %v894_v7  ;;  %v463_v7 = vrot.slane %v234_v51, 1  ;;  %v468_v45 = vrot.slane %v234_v51, 2 }
 0x1f9   : > { %1199 = vrot.lane.b32.xlu0 %v4455_v19, %s2448_s29 }
 0x1fa   : > { %v990_v52 = vpop.permute.xlu1 %989 }
 0x1fb   : > { %v896_v63 = vpop.permute.xlu0 %895  ;;  %v1425_v29 = vsel %vm1406_vm8, %v1392_v2, %v990_v52  ;;  %v1262_v52 = vsel %vm1241_vm3, %v2346_v60, %v4462_v54  ;;  %v4466_v2 = vld [vmem:[#allocation73_spill] sm:$0xff] }
 0x1fc   : > { %725 = vrot.lane.b32.xlu1 %v231_v41, %s2443_s4  ;;  %v1393_v27 = vsel %vm1373_vm7, %v1360_v8, %v896_v63  ;;  %v4463_v63 = vld [vmem:[#allocation74_spill] sm:$0xff] }
 0x1fd   : > { %1009 = vrot.lane.b32.xlu0 %v231_v41, %s2446_s24  ;;  %v464_v41 = vrot.slane %v235_v20, 1 }
 0x1fe   : > { %v1086_v49 = vpop.permute.xlu1 %1085 }
 0x1ff   : > { %v992_v53 = vpop.permute.xlu0 %991  ;;  %v1458_v39 = vsel %vm1439_vm9, %v1425_v29, %v1086_v49  ;;  %v469_v49 = vrot.slane %v235_v20, 2  ;;  %v465_v36 = vsel %vm285_vm0, %v463_v7, %v464_v41 }
 0x200   : > { %1105 = vrot.lane.b32.xlu1 %v452_v58, %s2447_s27  ;;  %v1426_v1 = vsel %vm1406_vm8, %v1393_v27, %v992_v53 }
 0x201   : > { %1011 = vrot.lane.b32.xlu0 %v232_v37, %s2446_s24  ;;  %v472_v11 = vsel %vm366_vm1, %v469_v49, %v471_v15  ;;  %v470_v24 = vsel %vm366_vm1, %v468_v45, %v469_v49 }
 0x202   : > { %v1088_v26 = vpop.permute.xlu1 %1087 }
 0x203   : > { %v802_v23 = vpop.permute.xlu0 %801  ;;  %v1459_v55 = vsel %vm1439_vm9, %v1426_v1, %v1088_v26 }
 0x204   : > { %821 = vrot.lane.b32.xlu1 %v452_v58, %s2444_s5  ;;  %v1295_v58 = vsel %vm1274_vm4, %v1262_v52, %v4463_v63 }
 0x205   : > { %727 = vrot.lane.b32.xlu0 %v232_v37, %s2443_s4  ;;  %v466_v37 = vrot.slane %v236_v38, 1  ;;  %v1328_v34 = vsel %vm1307_vm5, %v1295_v58, %v4464_v0  ;;  %v4471_v58 = vld [vmem:[#allocation56_spill] sm:$0xff] }
 0x206   : > { %v3900_v13 = vpop.permute.xlu1 %803  ;;  %v1361_v57 = vsel %vm1340_vm6, %v1328_v34, %v802_v23  ;;  %v2347_v23 = vld [vmem:[%s2524_s28 + $0xf8] sm:$0xff]  ;;  %v1265_v49 = vsel %vm1241_vm3, %v3594_v42, %v4471_v58 }
 0x207   : > { %v1182_v4 = vpop.permute.xlu0 %1181  ;;  %v467_v53 = vsel %vm285_vm0, %v464_v41, %v466_v37  ;;  %v1263_v35 = vsel %vm1241_vm3, %v2347_v23, %v4465_v30  ;;  %v4474_v23 = vld [vmem:[#allocation77_spill] sm:$0xff] }
 0x208   : > { %v1491_v17 = vsel %vm1472_vm10, %v1458_v39, %v1182_v4  ;;  %1201 = vrot.lane.b32.xlu1 %v457_v25, %s2448_s29 }
 0x209   : > { %1107 = vrot.lane.b32.xlu0 %v454_v59, %s2447_s27  ;;  %2235 = vmatprep.mubr.msk.f32.mxu1 %vm1505_vm11, %v1491_v17 }
 0x20a   : > { %v1184_v21 = vpop.permute.xlu1 %1183 }
 0x20b   : > { %v1492_v12 = vsel %vm1472_vm10, %v1459_v55, %v1184_v21  ;;  %v898_v48 = vpop.permute.xlu0 %897 }
 0x20c   : > { %917 = vrot.lane.b32.xlu1 %v457_v25, %s2445_s8  ;;  %2236 = vmatmul.mubr.msk.f32.gmra.mxu1 %vm1505_vm11, %v1492_v12  ;;  %v1394_v26 = vsel %vm1373_vm7, %v1361_v57, %v898_v48  ;;  %v1296_v25 = vsel %vm1274_vm4, %v1263_v35, %v4466_v2 }
 0x20d   : > { %823 = vrot.lane.b32.xlu0 %v454_v59, %s2444_s5  ;;  %v1329_v29 = vsel %vm1307_vm5, %v1296_v25, %v4467_v44 }
 0x20e   : > { %v994_v28 = vpop.permute.xlu1 %993  ;;  %v1362_v8 = vsel %vm1340_vm6, %v1329_v29, %v3900_v13 }
 0x20f   : > { %v900_v18 = vpop.permute.xlu0 %899  ;;  %v1427_v61 = vsel %vm1406_vm8, %v1394_v26, %v994_v28  ;;  %v4468_v28 = vld [vmem:[#allocation57_spill] sm:$0xff] }
 0x210   : > { %919 = vrot.lane.b32.xlu1 %v459_v10, %s2445_s8  ;;  %v1395_v39 = vsel %vm1373_vm7, %v1362_v8, %v900_v18  ;;  %v4470_v18 = vld [vmem:[#allocation18_spill] sm:$0xff] }
 0x211   : > { %1203 = vrot.lane.b32.xlu0 %v459_v10, %s2448_s29  ;;  %v2348_v10 = vld [vmem:[%s2524_s28 + $0x108] sm:$0xff]  ;;  %s4145_s28 = sand.u32 1, %s2431_s13  }
 0x212   : > { %v1090_v47 = vpop.permute.xlu1 %1089  ;;  %v1264_v13 = vsel %vm1241_vm3, %v2348_v10, %v4468_v28  ;;  %s166_s4 = scalar_lea.vmem [#allocation2], %s4145_s28  ;;  %s172_s6 = scalar_lea.vmem [#allocation4], %s4145_s28 }
 0x213   : > { %v996_v19 = vpop.permute.xlu0 %995  ;;  %v1460_v56 = vsel %vm1439_vm9, %v1427_v61, %v1090_v47  ;;  %s2023_s5 = sshll.u32 %s166_s4, 4  ;;  %s2036_s7 = sshll.u32 %s172_s6, 4  ;;  %s4157_s5 = int_to_ptr.vmem [resolvable:$true] %s2023_s5  ;;  %s4165_s7 = int_to_ptr.vmem [resolvable:$true] %s2036_s7 }
 0x214   : > { %1015 = vrot.lane.b32.xlu1 %v235_v20, %s2446_s24  ;;  %v1428_v4 = vsel %vm1406_vm8, %v1395_v39, %v996_v19  ;;  %v4469_v20 = vld [vmem:[#allocation76_spill] sm:$0xff]  ;;  %s2007_s19 = scalar_lea.sflag [#allocation3], %s4145_s28  ;;  %s2349_s20 = scalar_lea.vmem %s4157_s5, 16 }
 0x215   : > { %1013 = vrot.lane.b32.xlu0 %v234_v51, %s2446_s24  ;;  %v1297_v38 = vsel %vm1274_vm4, %v1264_v13, %v4469_v20  ;;  %p2350_p11 = scmp.ne.s32.totalorder %s4157_s5, %s2349_s20  ;;  %s2449_s24 = smov [#allocation2]  }
 0x216   : > { %v806_v40 = vpop.permute.xlu1 %805  ;;  %v1330_v51 = vsel %vm1307_vm5, %v1297_v38, %v4470_v18  ;;  %s2353_s25 = sshll.u32 %s2449_s24, 4  ;;  %s2354_s25 = int_to_ptr.vmem [resolvable:$false] %s2353_s25 }
 0x217   : > { %v712_v14 = vpop.permute.xlu0 %711  ;;  %v1363_v37 = vsel %vm1340_vm6, %v1330_v51, %v806_v40  ;;  %p2351_p12 = pnand %p2350_p11, %p2509_p5  ;;  %s2355_s26 = scalar_lea.vmem %s2354_s25, 32 }
 0x218   : > { %1111 = vrot.lane.b32.xlu1 %v467_v53, %s2447_s27  ;;  %v4472_v53 = vld [vmem:[#allocation75_spill] sm:$0xff]  ;;  %p2356_p0 = scmp.lt.s32.totalorder %s4157_s5, %s2354_s25  ;;  %p2357_p1 = scmp.lt.s32.totalorder %s2355_s26, %s2349_s20 }
 0x219   : > { %1109 = vrot.lane.b32.xlu0 %v465_v36, %s2447_s27  ;;  %v1298_v15 = vsel %vm1274_vm4, %v1265_v49, %v4472_v53  ;;  %p2352_p13 = pneg %p2351_p12 }
 0x21a   : > { %v1186_v5 = vpop.permute.xlu1 %1185  ;;  %v1331_v34 = vsel %vm1307_vm5, %v1298_v15, %v712_v14  ;;  %v4473_v14 = vld [vmem:[#allocation59_spill] sm:$0xff]  ;;  %p2358_p2 = por %p2357_p1, %p2356_p0 }
 0x21b   : > { %v1493_v16 = vsel %vm1472_vm10, %v1460_v56, %v1186_v5  ;;  %v1092_v31 = vpop.permute.xlu0 %1091 }
 0x21c   : > { %1207 = vrot.lane.b32.xlu1 %v472_v11, %s2448_s29  ;;  %2238 = vmatprep.mubr.msk.f32.mxu1 %vm1505_vm11, %v1493_v16  ;;  %v1461_v17 = vsel %vm1439_vm9, %v1428_v4, %v1092_v31  ;;  %v1266_v31 = vsel %vm1241_vm3, %v3623_v9, %v4473_v14  ;;  %v4475_v9 = vld [vmem:[#allocation58_spill] sm:$0xff]  ;;  %p2359_p3 = pnand %p2358_p2, %p2352_p13 }
 0x21d   : > { %1205 = vrot.lane.b32.xlu0 %v470_v24, %s2448_s29  ;;  %v1299_v30 = vsel %vm1274_vm4, %v1266_v31, %v4474_v23 }
 0x21e   : > { %v902_v46 = vpop.permute.xlu1 %901 }
 0x21f   : > { %v808_v59 = vpop.permute.xlu0 %807  ;;  %v1396_v7 = vsel %vm1373_vm7, %v1363_v37, %v902_v46  ;;  %v4477_v37 = vld [vmem:[#allocation61_spill] sm:$0xff] }
 0x220   : > { %v1364_v40 = vsel %vm1340_vm6, %v1331_v34, %v808_v59 }
 0x222   : > { %v904_v27 = vpop.permute.xlu1 %903 }
 0x223   : > { %v1188_v1 = vpop.permute.xlu0 %1187  ;;  %v1397_v36 = vsel %vm1373_vm7, %v1364_v40, %v904_v27  ;;  %v1267_v27 = vsel %vm1241_vm3, %v3646_v33, %v4475_v9  ;;  %v4480_v40 = vld [vmem:[#allocation11_spill] sm:$0xff] }
 0x224   : > { %v1494_v50 = vsel %vm1472_vm10, %v1461_v17, %v1188_v1  ;;  %v4476_v17 = vld [vmem:[#allocation12_spill] sm:$0xff] }
 0x225   : > { %2239 = vmatmul.mubr.msk.f32.gmra.mxu1 %vm1505_vm11, %v1494_v50  ;;  %v1300_v1 = vsel %vm1274_vm4, %v1267_v27, %v4476_v17 }
 0x226   : > { %v714_v55 = vpop.permute.xlu1 %713 }
 0x227   : > { %v998_v21 = vpop.permute.xlu0 %997  ;;  %v1332_v35 = vsel %vm1307_vm5, %v1299_v30, %v714_v55 }
 0x228   : > { %v1429_v19 = vsel %vm1406_vm8, %v1396_v7, %v998_v21  ;;  %v4478_v7 = vld [vmem:[#allocation78_spill] sm:$0xff] }
 0x22a   : > { %v1094_v12 = vpop.permute.xlu1 %1093 }
 0x22b   : > { %v1000_v48 = vpop.permute.xlu0 %999  ;;  %v1462_v60 = vsel %vm1439_vm9, %v1429_v19, %v1094_v12 }
 0x22c   : > { %v1430_v57 = vsel %vm1406_vm8, %v1397_v36, %v1000_v48 }
 0x22e   : > { %v810_v41 = vpop.permute.xlu1 %809 }
 0x22f   : > { %v716_v47 = vpop.permute.xlu0 %715  ;;  %v1365_v25 = vsel %vm1340_vm6, %v1332_v35, %v810_v41  ;;  %v4481_v35 = vld [vmem:[#allocation63_spill] sm:$0xff] }
 0x230   : > { %v1333_v55 = vsel %vm1307_vm5, %v1300_v1, %v716_v47  ;;  %v1268_v47 = vsel %vm1241_vm3, %v3690_v3, %v4477_v37  ;;  %v4479_v3 = vld [vmem:[#allocation60_spill] sm:$0xff] }
 0x231   : > { %v1301_v19 = vsel %vm1274_vm4, %v1268_v47, %v4478_v7  ;;  %v4485_v37 = vld [vmem:[#allocation64_spill] sm:$0xff]  ;;  %v4486_v7 = vld [vmem:[#allocation65_spill] sm:$0xff] }
 0x232   : > { %v1190_v54 = vpop.permute.xlu1 %1189  ;;  %v1273_v47 = vsel %vm1241_vm3, %v3826_v62, %v4485_v37 }
 0x233   : > { %v1495_v52 = vsel %vm1472_vm10, %v1462_v60, %v1190_v54  ;;  %v1096_v63 = vpop.permute.xlu0 %1095 }
 0x234   : > { %2241 = vmatprep.mubr.msk.f32.mxu1 %vm1505_vm11, %v1495_v52  ;;  %v1463_v61 = vsel %vm1439_vm9, %v1430_v57, %v1096_v63 }
 0x236   : > { %v906_v0 = vpop.permute.xlu1 %905 }
 0x237   : > { %v812_v45 = vpop.permute.xlu0 %811  ;;  %v1398_v44 = vsel %vm1373_vm7, %v1365_v25, %v906_v0  ;;  %v4482_v25 = vld [vmem:[#allocation80_spill] sm:$0xff] }
 0x238   : > { %v1366_v12 = vsel %vm1340_vm6, %v1333_v55, %v812_v45  ;;  %v1269_v45 = vsel %vm1241_vm3, %v3710_v43, %v4479_v3  ;;  %v4484_v55 = vld [vmem:[#allocation79_spill] sm:$0xff] }
 0x239   : > { %v1302_v36 = vsel %vm1274_vm4, %v1269_v45, %v4480_v40 }
 0x23a   : > { %v908_v26 = vpop.permute.xlu1 %907 }
 0x23b   : > { %v1192_v11 = vpop.permute.xlu0 %1191  ;;  %v1399_v48 = vsel %vm1373_vm7, %v1366_v12, %v908_v26 }
 0x23c   : > { %v1496_v56 = vsel %vm1472_vm10, %v1463_v61, %v1192_v11 }
 0x23d   : > { %2242 = vmatmul.mubr.msk.f32.gmra.mxu1 %vm1505_vm11, %v1496_v56 }
 0x23e   : > { %v718_v42 = vpop.permute.xlu1 %717 }
 0x23f   : > { %v1002_v5 = vpop.permute.xlu0 %1001  ;;  %v1334_v60 = vsel %vm1307_vm5, %v1301_v19, %v718_v42  ;;  %v1272_v19 = vsel %vm1241_vm3, %v3816_v32, %v4486_v7 }
 0x240   : > { %v1431_v29 = vsel %vm1406_vm8, %v1398_v44, %v1002_v5 }
 0x242   : > { %v1098_v24 = vpop.permute.xlu1 %1097 }
 0x243   : > { %v1004_v16 = vpop.permute.xlu0 %1003  ;;  %v1464_v59 = vsel %vm1439_vm9, %v1431_v29, %v1098_v24 }
 0x244   : > { %v1432_v10 = vsel %vm1406_vm8, %v1399_v48, %v1004_v16 }
 0x246   : > { %v814_v2 = vpop.permute.xlu1 %813 }
 0x247   : > { %v720_v46 = vpop.permute.xlu0 %719  ;;  %v1367_v52 = vsel %vm1340_vm6, %v1334_v60, %v814_v2  ;;  %v1270_v2 = vsel %vm1241_vm3, %v3756_v22, %v4481_v35  ;;  %v4483_v22 = vld [vmem:[#allocation62_spill] sm:$0xff]  ;;  %v4487_v60 = vld [vmem:[#allocation81_spill] sm:$0xff] }
 0x248   : > { %v1335_v26 = vsel %vm1307_vm5, %v1302_v36, %v720_v46  ;;  %v1303_v46 = vsel %vm1274_vm4, %v1270_v2, %v4482_v25 }
 0x24a   : > { %v1194_v8 = vpop.permute.xlu1 %1193 }
 0x24b   : > { %v1497_v39 = vsel %vm1472_vm10, %v1464_v59, %v1194_v8  ;;  %v1100_v4 = vpop.permute.xlu0 %1099 }
 0x24c   : > { %2244 = vmatprep.mubr.msk.f32.mxu1 %vm1505_vm11, %v1497_v39  ;;  %v1465_v13 = vsel %vm1439_vm9, %v1432_v10, %v1100_v4 }
 0x24e   : > { %v910_v50 = vpop.permute.xlu1 %909 }
 0x24f   : > { %v816_v21 = vpop.permute.xlu0 %815  ;;  %v1400_v58 = vsel %vm1373_vm7, %v1367_v52, %v910_v50  ;;  %v1271_v50 = vsel %vm1241_vm3, %v3770_v6, %v4483_v22  ;;  %v4488_v52 = vld [vmem:[#allocation82_spill] sm:$0xff] }
 0x250   : > { %v1368_v11 = vsel %vm1340_vm6, %v1335_v26, %v816_v21  ;;  %v1304_v21 = vsel %vm1274_vm4, %v1271_v50, %v4484_v55 }
 0x252   : > { %v912_v28 = vpop.permute.xlu1 %911 }
 0x253   : > { %v1196_v20 = vpop.permute.xlu0 %1195  ;;  %v1401_v56 = vsel %vm1373_vm7, %v1368_v11, %v912_v28 }
 0x254   : > { %v1498_v38 = vsel %vm1472_vm10, %v1465_v13, %v1196_v20 }
 0x255   : > { %2245 = vmatmul.mubr.msk.f32.gmra.mxu1 %vm1505_vm11, %v1498_v38 }
 0x256   : > { %v722_v33 = vpop.permute.xlu1 %721 }
 0x257   : > { %v1006_v18 = vpop.permute.xlu0 %1005  ;;  %v1336_v44 = vsel %vm1307_vm5, %v1303_v46, %v722_v33 }
 0x258   : > { %v1433_v49 = vsel %vm1406_vm8, %v1400_v58, %v1006_v18 }
 0x25a   : > { %v1102_v51 = vpop.permute.xlu1 %1101 }
 0x25b   : > { %v1008_v41 = vpop.permute.xlu0 %1007  ;;  %v1466_v53 = vsel %vm1439_vm9, %v1433_v49, %v1102_v51 }
 0x25c   : > { %v1434_v42 = vsel %vm1406_vm8, %v1401_v56, %v1008_v41  ;;  %v2210_v56 = vpop.f32.mrf.mxu0 }
 0x25e   : > { %v818_v54 = vpop.permute.xlu1 %817 }
 0x25f   : > { %v724_v63 = vpop.permute.xlu0 %723  ;;  %v1369_v59 = vsel %vm1340_vm6, %v1336_v44, %v818_v54  ;;  %v1306_v54 = vsel %vm1274_vm4, %v1273_v47, %v4487_v60 }
 0x260   : > { %v1337_v48 = vsel %vm1307_vm5, %v1304_v21, %v724_v63  ;;  %v1305_v63 = vsel %vm1274_vm4, %v1272_v19, %v4488_v52 }
 0x262   : > { %v1198_v15 = vpop.permute.xlu1 %1197 }
 0x263   : > { %v1499_v0 = vsel %vm1472_vm10, %v1466_v53, %v1198_v15  ;;  %v1104_v34 = vpop.permute.xlu0 %1103 }
 0x264   : > { %2247 = vmatprep.mubr.msk.f32.mxu1 %vm1505_vm11, %v1499_v0  ;;  %v1467_v24 = vsel %vm1439_vm9, %v1434_v42, %v1104_v34  ;;  %v1672_v42 = vpop.f32.mrf.mxu0 }
 0x266   : > { %v914_v57 = vpop.permute.xlu1 %913 }
 0x267   : > { %v820_v61 = vpop.permute.xlu0 %819  ;;  %v1402_v39 = vsel %vm1373_vm7, %v1369_v59, %v914_v57 }
 0x268   : > { %v1370_v28 = vsel %vm1340_vm6, %v1337_v48, %v820_v61 }
 0x26a   : > { %v916_v5 = vpop.permute.xlu1 %915 }
 0x26b   : > { %v1200_v16 = vpop.permute.xlu0 %1199  ;;  %v1403_v13 = vsel %vm1373_vm7, %v1370_v28, %v916_v5  ;;  %v2213_v5 = vpop.f32.mrf.mxu0 }
 0x26c   : > { %v1500_v14 = vsel %vm1472_vm10, %v1467_v24, %v1200_v16  ;;  %v1901_v16 = vmul.f32 %v1672_v42, %v1672_v42 }
 0x26d   : > { %2248 = vmatmul.mubr.msk.f32.gmra.mxu1 %vm1505_vm11, %v1500_v14  ;;  %v1682_v24 = vpop.f32.mrf.mxu0 }
 0x26e   : > { %v726_v43 = vpop.permute.xlu1 %725  ;;  %v1933_v35 = vsel %vm1274_vm4, %v1901_v16, 0.0  ;;  %v1834_v2 = vsel %vm1274_vm4, %v1682_v24, 0.0 }
 0x26f   : > { %v1010_v31 = vpop.permute.xlu0 %1009  ;;  %v1338_v53 = vsel %vm1307_vm5, %v1305_v63, %v726_v43  ;;  %v2216_v14 = vpop.f32.mrf.mxu0  ;;  %v1902_v43 = vmul.f32 %v2210_v56, %v2210_v56 }
 0x270   : > { %v1435_v4 = vsel %vm1406_vm8, %v1402_v39, %v1010_v31  ;;  %v1831_v31 = vsel %vm1274_vm4, %v1672_v42, 0.0  ;;  %v1906_v28 = vmul.f32 %v2216_v14, %v2216_v14 }
 0x271   : > { %v1692_v46 = vpop.f32.mrf.mxu0  ;;  %v1934_v44 = vsel %vm1274_vm4, %v1902_v43, 0.0 }
 0x272   : > { %v1106_v23 = vpop.permute.xlu1 %1105  ;;  %v1935_v59 = vadd.f32 %v1934_v44, %v1933_v35 }
 0x273   : > { %v1012_v30 = vpop.permute.xlu0 %1011  ;;  %v1468_v9 = vsel %vm1439_vm9, %v1435_v4, %v1106_v23  ;;  %v1903_v23 = vmul.f32 %v1682_v24, %v1682_v24  ;;  %v2219_v39 = vpop.f32.mrf.mxu0  ;;  %v1904_v4 = vmul.f32 %v2213_v5, %v2213_v5 }
 0x274   : > { %v1436_v20 = vsel %vm1406_vm8, %v1403_v13, %v1012_v30  ;;  %v1832_v30 = vsel %vm1274_vm4, %v2210_v56, 0.0  ;;  %v1908_v19 = vmul.f32 %v2219_v39, %v2219_v39  ;;  %v1844_v52 = vsel %vm1274_vm4, %v2219_v39, 0.0 }
 0x275   : > { %v1833_v25 = vadd.f32 %v1832_v30, %v1831_v31  ;;  %v1702_v50 = vpop.f32.mrf.mxu0  ;;  %v1938_v55 = vsel %vm1274_vm4, %v1904_v4, 0.0 }
 0x276   : > { %v822_v29 = vpop.permute.xlu1 %821  ;;  %v1907_v13 = vmul.f32 %v1702_v50, %v1702_v50 }
 0x277   : > { %v728_v8 = vpop.permute.xlu0 %727  ;;  %v1371_v62 = vsel %vm1340_vm6, %v1338_v53, %v822_v29  ;;  %v1936_v29 = vsel %vm1274_vm4, %v1903_v23, 0.0  ;;  %v1946_v53 = vsel %vm1274_vm4, %v1908_v19, 0.0 }
 0x278   : > { %v1339_v58 = vsel %vm1307_vm5, %v1306_v54, %v728_v8  ;;  %v1835_v8 = vadd.f32 %v1834_v2, %v1833_v25 }
 0x27a   : > { %v1202_v27 = vpop.permute.xlu1 %1201 }
 0x27b   : > { %v1501_v17 = vsel %vm1472_vm10, %v1468_v9, %v1202_v27  ;;  %v1108_v1 = vpop.permute.xlu0 %1107  ;;  %v1905_v9 = vmul.f32 %v1692_v46, %v1692_v46  ;;  %v1937_v27 = vadd.f32 %v1936_v29, %v1935_v59 }
 0x27c   : > { %2250 = vmatprep.mubr.msk.f32.mxu1 %vm1505_vm11, %v1501_v17  ;;  %v1469_v33 = vsel %vm1439_vm9, %v1436_v20, %v1108_v1  ;;  %v1836_v17 = vsel %vm1274_vm4, %v2213_v5, 0.0  ;;  %v1838_v1 = vsel %vm1274_vm4, %v1692_v46, 0.0 }
 0x27d   : > { %v1837_v22 = vadd.f32 %v1836_v17, %v1835_v8  ;;  %v1940_v21 = vsel %vm1274_vm4, %v1905_v9, 0.0  ;;  %v1939_v48 = vadd.f32 %v1938_v55, %v1937_v27 }
 0x27e   : > { %v918_v12 = vpop.permute.xlu1 %917 }
 0x27f   : > { %v824_v10 = vpop.permute.xlu0 %823  ;;  %v1404_v32 = vsel %vm1373_vm7, %v1371_v62, %v918_v12  ;;  %v1839_v12 = vadd.f32 %v1838_v1, %v1837_v22  ;;  %v1941_v20 = vadd.f32 %v1940_v21, %v1939_v48 }
 0x280   : > { %v1372_v15 = vsel %vm1340_vm6, %v1339_v58, %v824_v10  ;;  %v2222_v10 = vpop.f32.mrf.mxu0 }
 0x282   : > { %v920_v38 = vpop.permute.xlu1 %919 }
 0x283   : > { %v1204_v18 = vpop.permute.xlu0 %1203  ;;  %v1405_v34 = vsel %vm1373_vm7, %v1372_v15, %v920_v38  ;;  %v1840_v38 = vsel %vm1274_vm4, %v2216_v14, 0.0 }
 0x284   : > { %v1502_v51 = vsel %vm1472_vm10, %v1469_v33, %v1204_v18  ;;  %v1842_v33 = vsel %vm1274_vm4, %v1702_v50, 0.0  ;;  %v1841_v18 = vadd.f32 %v1840_v38, %v1839_v12 }
 0x285   : > { %2251 = vmatmul.mubr.msk.f32.gmra.mxu1 %vm1505_vm11, %v1502_v51  ;;  %v1712_v51 = vpop.f32.mrf.mxu0 }
 0x286   : > { %v1016_v6 = vpop.permute.xlu1 %1015  ;;  %v1843_v37 = vadd.f32 %v1842_v33, %v1841_v18  ;;  %v1909_v60 = vmul.f32 %v1712_v51, %v1712_v51  ;;  %v1846_v63 = vsel %vm1274_vm4, %v1712_v51, 0.0 }
 0x287   : > { %v1014_v41 = vpop.permute.xlu0 %1013  ;;  %v1438_v3 = vsel %vm1406_vm8, %v1405_v34, %v1016_v6  ;;  %v1942_v6 = vsel %vm1274_vm4, %v1906_v28, 0.0  ;;  %v2225_v7 = vpop.f32.mrf.mxu0 }
 0x288   : > { %v1437_v45 = vsel %vm1406_vm8, %v1404_v32, %v1014_v41  ;;  %v1944_v41 = vsel %vm1274_vm4, %v1907_v13, 0.0  ;;  %v1943_v47 = vadd.f32 %v1942_v6, %v1941_v20  ;;  %v1845_v58 = vadd.f32 %v1844_v52, %v1843_v37 }
 0x289   : > { %v1948_v15 = vsel %vm1274_vm4, %v1909_v60, 0.0  ;;  %v1910_v32 = vmul.f32 %v2222_v10, %v2222_v10  ;;  %v1912_v24 = vmul.f32 %v2225_v7, %v2225_v7  ;;  %v1852_v43 = vsel %vm1274_vm4, %v2225_v7, 0.0 }
 0x28a   : > { %v1112_v49 = vpop.permute.xlu1 %1111  ;;  %v1945_v54 = vadd.f32 %v1944_v41, %v1943_v47 }
 0x28b   : > { %v1110_v0 = vpop.permute.xlu0 %1109  ;;  %v1471_v40 = vsel %vm1439_vm9, %v1438_v3, %v1112_v49  ;;  %v1722_v49 = vpop.f32.mrf.mxu0  ;;  %v1954_v35 = vsel %vm1274_vm4, %v1912_v24, 0.0 }
 0x28c   : > { %v1470_v57 = vsel %vm1439_vm9, %v1437_v45, %v1110_v0  ;;  %v1847_v0 = vadd.f32 %v1846_v63, %v1845_v58  ;;  %v1947_v62 = vadd.f32 %v1946_v53, %v1945_v54  ;;  %v1911_v3 = vmul.f32 %v1722_v49, %v1722_v49 }
 0x28e   : > { %v1208_v36 = vpop.permute.xlu1 %1207  ;;  %v1949_v45 = vadd.f32 %v1948_v15, %v1947_v62 }
 0x28f   : > { %v1504_v26 = vsel %vm1472_vm10, %v1471_v40, %v1208_v36  ;;  %v1206_v61 = vpop.permute.xlu0 %1205  ;;  %v1848_v40 = vsel %vm1274_vm4, %v2222_v10, 0.0  ;;  %v1850_v36 = vsel %vm1274_vm4, %v1722_v49, 0.0 }
 0x290   : > { %v1503_v11 = vsel %vm1472_vm10, %v1470_v57, %v1206_v61  ;;  %v2228_v34 = vpop.f32.mrf.mxu0  ;;  %v1849_v57 = vadd.f32 %v1848_v40, %v1847_v0  ;;  %v1950_v61 = vsel %vm1274_vm4, %v1910_v32, 0.0 }
 0x291   : > { %2253 = vmatprep.mubr.msk.f32.mxu1 %vm1505_vm11, %v1503_v11  ;;  %v1952_v11 = vsel %vm1274_vm4, %v1911_v3, 0.0  ;;  %v1951_v42 = vadd.f32 %v1950_v61, %v1949_v45  ;;  %v1914_v29 = vmul.f32 %v2228_v34, %v2228_v34  ;;  %v1856_v39 = vsel %vm1274_vm4, %v2228_v34, 0.0 }
 0x292   : > { %2254 = vmatmul.mubr.msk.f32.gmra.mxu1 %vm1505_vm11, %v1504_v26  ;;  %v1732_v26 = vpop.f32.mrf.mxu0  ;;  %v1851_v56 = vadd.f32 %v1850_v36, %v1849_v57 }
 0x293   : > { %v1913_v16 = vmul.f32 %v1732_v26, %v1732_v26  ;;  %v1953_v14 = vadd.f32 %v1952_v11, %v1951_v42  ;;  %v1854_v31 = vsel %vm1274_vm4, %v1732_v26, 0.0  ;;  %v1958_v17 = vsel %vm1274_vm4, %v1914_v29, 0.0 }
 0x294   : > { %v1853_v23 = vadd.f32 %v1852_v43, %v1851_v56 }
 0x295   : > { %v1956_v2 = vsel %vm1274_vm4, %v1913_v16, 0.0  ;;  %v1955_v46 = vadd.f32 %v1954_v35, %v1953_v14 }
 0x296   : > { %v1855_v25 = vadd.f32 %v1854_v31, %v1853_v23 }
 0x297   : > { %v1957_v8 = vadd.f32 %v1956_v2, %v1955_v46 }
 0x298   : > { %v1857_v9 = vadd.f32 %v1856_v39, %v1855_v25 }
 0x299   : > { %v1959_v50 = vadd.f32 %v1958_v17, %v1957_v8 }
 0x2a4   : > { %v2231_v5 = vpop.f32.mrf.mxu0 }
 0x2a5   : > { %v1916_v21 = vmul.f32 %v2231_v5, %v2231_v5  ;;  %v1860_v10 = vsel %vm1274_vm4, %v2231_v5, 0.0 }
 0x2a6   : > { %v1742_v30 = vpop.f32.mrf.mxu0 }
 0x2a7   : > { %v1915_v59 = vmul.f32 %v1742_v30, %v1742_v30  ;;  %v1858_v4 = vsel %vm1274_vm4, %v1742_v30, 0.0  ;;  %v1962_v38 = vsel %vm1274_vm4, %v1916_v21, 0.0 }
 0x2a8   : > { %v1859_v22 = vadd.f32 %v1858_v4, %v1857_v9 }
 0x2a9   : > { %v1960_v1 = vsel %vm1274_vm4, %v1915_v59, 0.0 }
 0x2aa   : > { %v1961_v48 = vadd.f32 %v1960_v1, %v1959_v50  ;;  %v1861_v13 = vadd.f32 %v1860_v10, %v1859_v22 }
 0x2ac   : > { %v1963_v18 = vadd.f32 %v1962_v38, %v1961_v48 }
 0x2b8   : > { %v2234_v44 = vpop.f32.mrf.mxu1 }
 0x2b9   : > { %v1918_v41 = vmul.f32 %v2234_v44, %v2234_v44  ;;  %v1864_v7 = vsel %vm1274_vm4, %v2234_v44, 0.0 }
 0x2ba   : > { %v1752_v27 = vpop.f32.mrf.mxu1 }
 0x2bb   : > { %v1917_v12 = vmul.f32 %v1752_v27, %v1752_v27  ;;  %v1862_v28 = vsel %vm1274_vm4, %v1752_v27, 0.0  ;;  %v1966_v52 = vsel %vm1274_vm4, %v1918_v41, 0.0 }
 0x2bc   : > { %v1863_v51 = vadd.f32 %v1862_v28, %v1861_v13 }
 0x2bd   : > { %v1964_v33 = vsel %vm1274_vm4, %v1917_v12, 0.0 }
 0x2be   : > { %v1965_v47 = vadd.f32 %v1964_v33, %v1963_v18  ;;  %v1865_v60 = vadd.f32 %v1864_v7, %v1863_v51 }
 0x2c0   : > { %v1967_v49 = vadd.f32 %v1966_v52, %v1965_v47 }
 0x2cc   : > { %v2237_v55 = vpop.f32.mrf.mxu1 }
 0x2cd   : > { %v1920_v15 = vmul.f32 %v2237_v55, %v2237_v55  ;;  %v1868_v34 = vsel %vm1274_vm4, %v2237_v55, 0.0 }
 0x2ce   : > { %v1762_v20 = vpop.f32.mrf.mxu1 }
 0x2cf   : > { %v1919_v37 = vmul.f32 %v1762_v20, %v1762_v20  ;;  %v1866_v19 = vsel %vm1274_vm4, %v1762_v20, 0.0  ;;  %v1970_v40 = vsel %vm1274_vm4, %v1920_v15, 0.0 }
 0x2d0   : > { %v1867_v58 = vadd.f32 %v1866_v19, %v1865_v60 }
 0x2d1   : > { %v1968_v63 = vsel %vm1274_vm4, %v1919_v37, 0.0 }
 0x2d2   : > { %v1969_v62 = vadd.f32 %v1968_v63, %v1967_v49  ;;  %v1869_v3 = vadd.f32 %v1868_v34, %v1867_v58 }
 0x2d4   : > { %v1971_v26 = vadd.f32 %v1970_v40, %v1969_v62 }
 0x2e5   : > { %v2240_v6 = vpop.f32.mrf.mxu1 }
 0x2e6   : > { %v1922_v11 = vmul.f32 %v2240_v6, %v2240_v6  ;;  %v1872_v5 = vsel %vm1274_vm4, %v2240_v6, 0.0 }
 0x2e7   : > { %v1772_v54 = vpop.f32.mrf.mxu1 }
 0x2e8   : > { %v1921_v0 = vmul.f32 %v1772_v54, %v1772_v54  ;;  %v1870_v32 = vsel %vm1274_vm4, %v1772_v54, 0.0  ;;  %v1974_v43 = vsel %vm1274_vm4, %v1922_v11, 0.0 }
 0x2e9   : > { %v1871_v57 = vadd.f32 %v1870_v32, %v1869_v3 }
 0x2ea   : > { %v1972_v36 = vsel %vm1274_vm4, %v1921_v0, 0.0 }
 0x2eb   : > { %v1973_v42 = vadd.f32 %v1972_v36, %v1971_v26  ;;  %v1873_v16 = vadd.f32 %v1872_v5, %v1871_v57 }
 0x2ed   : > { %v1975_v30 = vadd.f32 %v1974_v43, %v1973_v42 }
 0x2fd   : > { %v2243_v53 = vpop.f32.mrf.mxu1 }
 0x2fe   : > { %v1924_v2 = vmul.f32 %v2243_v53, %v2243_v53  ;;  %v1876_v44 = vsel %vm1274_vm4, %v2243_v53, 0.0 }
 0x2ff   : > { %v1782_v45 = vpop.f32.mrf.mxu1 }
 0x300   : > { %v1923_v56 = vmul.f32 %v1782_v45, %v1782_v45  ;;  %v1874_v24 = vsel %vm1274_vm4, %v1782_v45, 0.0  ;;  %v1978_v39 = vsel %vm1274_vm4, %v1924_v2, 0.0 }
 0x301   : > { %v1875_v23 = vadd.f32 %v1874_v24, %v1873_v16 }
 0x302   : > { %v1976_v31 = vsel %vm1274_vm4, %v1923_v56, 0.0 }
 0x303   : > { %v1977_v46 = vadd.f32 %v1976_v31, %v1975_v30  ;;  %v1877_v59 = vadd.f32 %v1876_v44, %v1875_v23 }
 0x305   : > { %v1979_v27 = vadd.f32 %v1978_v39, %v1977_v46 }
 0x315   : > { %v2246_v61 = vpop.f32.mrf.mxu1 }
 0x316   : > { %v1926_v17 = vmul.f32 %v2246_v61, %v2246_v61  ;;  %v1880_v55 = vsel %vm1274_vm4, %v2246_v61, 0.0 }
 0x317   : > { %v1792_v14 = vpop.f32.mrf.mxu1 }
 0x318   : > { %v1925_v25 = vmul.f32 %v1792_v14, %v1792_v14  ;;  %v1878_v29 = vsel %vm1274_vm4, %v1792_v14, 0.0  ;;  %v1982_v10 = vsel %vm1274_vm4, %v1926_v17, 0.0 }
 0x319   : > { %v1879_v9 = vadd.f32 %v1878_v29, %v1877_v59 }
 0x31a   : > { %v1980_v4 = vsel %vm1274_vm4, %v1925_v25, 0.0 }
 0x31b   : > { %v1981_v50 = vadd.f32 %v1980_v4, %v1979_v27  ;;  %v1881_v12 = vadd.f32 %v1880_v55, %v1879_v9 }
 0x31d   : > { %v1983_v20 = vadd.f32 %v1982_v10, %v1981_v50 }
 0x32d   : > { %v2249_v35 = vpop.f32.mrf.mxu1 }
 0x32e   : > { %v1928_v38 = vmul.f32 %v2249_v35, %v2249_v35  ;;  %v1884_v51 = vsel %vm1274_vm4, %v2249_v35, 0.0 }
 0x32f   : > { %v1802_v8 = vpop.f32.mrf.mxu1 }
 0x330   : > { %v1927_v1 = vmul.f32 %v1802_v8, %v1802_v8  ;;  %v1882_v21 = vsel %vm1274_vm4, %v1802_v8, 0.0  ;;  %v1986_v37 = vsel %vm1274_vm4, %v1928_v38, 0.0 }
 0x331   : > { %v1883_v13 = vadd.f32 %v1882_v21, %v1881_v12 }
 0x332   : > { %v1984_v28 = vsel %vm1274_vm4, %v1927_v1, 0.0 }
 0x333   : > { %v1985_v18 = vadd.f32 %v1984_v28, %v1983_v20  ;;  %v1885_v41 = vadd.f32 %v1884_v51, %v1883_v13 }
 0x335   : > { %v1987_v19 = vadd.f32 %v1986_v37, %v1985_v18 }
 0x345   : > { %v2252_v22 = vpop.f32.mrf.mxu1 }
 0x346   : > { %v1930_v60 = vmul.f32 %v2252_v22, %v2252_v22  ;;  %v1888_v63 = vsel %vm1274_vm4, %v2252_v22, 0.0 }
 0x347   : > { %v1812_v48 = vpop.f32.mrf.mxu1 }
 0x348   : > { %v1929_v33 = vmul.f32 %v1812_v48, %v1812_v48  ;;  %v1886_v6 = vsel %vm1274_vm4, %v1812_v48, 0.0  ;;  %v1990_v53 = vsel %vm1274_vm4, %v1930_v60, 0.0 }
 0x349   : > { %v1887_v7 = vadd.f32 %v1886_v6, %v1885_v41 }
 0x34a   : > { %v1988_v47 = vsel %vm1274_vm4, %v1929_v33, 0.0 }
 0x34b   : > { %v1989_v54 = vadd.f32 %v1988_v47, %v1987_v19  ;;  %v1889_v49 = vadd.f32 %v1888_v63, %v1887_v7 }
 0x34d   : > { %v1991_v32 = vadd.f32 %v1990_v53, %v1989_v54 }
 0x352   : > { %v2255_v52 = vpop.f32.mrf.mxu1 }
 0x353   : > { %v1932_v15 = vmul.f32 %v2255_v52, %v2255_v52  ;;  %v1892_v3 = vsel %vm1274_vm4, %v2255_v52, 0.0 }
 0x354   : > { %v1822_v58 = vpop.f32.mrf.mxu1 }
 0x355   : > { %v1890_v0 = vsel %vm1274_vm4, %v1822_v58, 0.0  ;;  %v1931_v62 = vmul.f32 %v1822_v58, %v1822_v58  ;;  %v1994_v57 = vsel %vm1274_vm4, %v1932_v15, 0.0 }
 0x356   : > { %v1891_v34 = vadd.f32 %v1890_v0, %v1889_v49 }
 0x357   : > { %v1992_v45 = vsel %vm1274_vm4, %v1931_v62, 0.0 }
 0x358   : > { %v1893_v40 = vadd.f32 %v1892_v3, %v1891_v34  ;;  %v1993_v36 = vadd.f32 %v1992_v45, %v1991_v32 }
 0x35a   : > { %v1894_v26 = vrot.slane %v1893_v40, 4  ;;  %v1995_v61 = vadd.f32 %v1994_v57, %v1993_v36 }
 0x35c   : > { %v1895_v11 = vadd.f32 %v1894_v26, %v1893_v40  ;;  %v1996_v56 = vrot.slane %v1995_v61, 4 }
 0x35e   : > { %v1896_v42 = vrot.slane %v1895_v11, 2  ;;  %v1997_v5 = vadd.f32 %v1996_v56, %v1995_v61 }
 0x360   : > { %v1897_v24 = vadd.f32 %v1896_v42, %v1895_v11  ;;  %v1998_v16 = vrot.slane %v1997_v5, 2 }
 0x362   : > { %v1898_v14 = vrot.slane %v1897_v24, 1  ;;  %v1999_v43 = vadd.f32 %v1998_v16, %v1997_v5 }
 0x364   : > { %v1899_v31 = vadd.f32 %v1898_v14, %v1897_v24  ;;  %v2000_v23 = vrot.slane %v1999_v43, 1 }
 0x366   : > { %2004 = vst.msk [vmem:[%s166_s4] sm:$0x1] %vm2003_vm12, %v1899_v31  ;;  %v2001_v30 = vadd.f32 %v2000_v23, %v1999_v43 }
 0x367   : > { %2362 = shalt.err (!%p2359_p3)
}
 0x368   : > { %s2363_s27 = scalar_lea.hbm %s4155_s10, 16  ;;  %s2367_s4 = scalar_lea.hbm %s4231_s2, 32 }
 0x369   : > { %p2364_p4 = scmp.ne.s32.totalorder %s4155_s10, %s2363_s27  ;;  %p2368_p9 = scmp.lt.s32.totalorder %s4155_s10, %s4231_s2 }
 0x36a   : > { %p2369_p10 = scmp.lt.s32.totalorder %s2367_s4, %s2363_s27 }
 0x36b   : > { %p2365_p7 = pnand %p2364_p4, %p2509_p5 }
 0x36c   : > { %p2370_p11 = por %p2369_p10, %p2368_p9 }
 0x36d   : > { %p2366_p8 = pneg %p2365_p7 }
 0x36f   : > { %p2371_p12 = pnand %p2370_p11, %p2366_p8 }
 0x371   : > { %2374 = shalt.err (!%p2371_p12)
}
 0x372   : > { %2267 = dma.vmem_to_hbm [thread:$0]  (%p2509_p5), %s4157_s5, 16, %s4155_s10, %s2007_s19   ;;  %2005 = vst.msk [vmem:[%s172_s6] sm:$0x1] %vm2003_vm12, %v2001_v30 }
 0x373   : > { %s2011_s16 = scalar_lea.sflag [#allocation5], %s4145_s28  ;;  %s2375_s11 = scalar_lea.vmem %s4165_s7, 16 }
 0x374   : > { %p2376_p13 = scmp.ne.s32.totalorder %s4165_s7, %s2375_s11  ;;  %s2450_s20 = smov [#allocation4]  }
 0x375   : > { %s2379_s24 = sshll.u32 %s2450_s20, 4  ;;  %s2380_s24 = int_to_ptr.vmem [resolvable:$false] %s2379_s24 }
 0x376   : > { %p2377_p0 = pnand %p2376_p13, %p2509_p5  ;;  %s2381_s25 = scalar_lea.vmem %s2380_s24, 32 }
 0x377   : > { %p2382_p2 = scmp.lt.s32.totalorder %s4165_s7, %s2380_s24  ;;  %p2383_p3 = scmp.lt.s32.totalorder %s2381_s25, %s2375_s11 }
 0x378   : > { %p2378_p1 = pneg %p2377_p0 }
 0x379   : > { %p2384_p4 = por %p2383_p3, %p2382_p2 }
 0x37b   : > { %p2385_p7 = pnand %p2384_p4, %p2378_p1 }
 0x37d   : > { %2388 = shalt.err (!%p2385_p7)
}
 0x37e   : > { %s2389_s5 = scalar_lea.hbm %s4163_s17, 16  ;;  %s2393_s10 = scalar_lea.hbm %s4232_s3, 32 }
 0x37f   : > { %p2390_p8 = scmp.ne.s32.totalorder %s4163_s17, %s2389_s5  ;;  %p2394_p11 = scmp.lt.s32.totalorder %s4163_s17, %s4232_s3 }
 0x380   : > { %p2395_p12 = scmp.lt.s32.totalorder %s2393_s10, %s2389_s5 }
 0x381   : > { %p2391_p9 = pnand %p2390_p8, %p2509_p5 }
 0x382   : > { %p2396_p13 = por %p2395_p12, %p2394_p11 }
 0x383   : > { %p2392_p10 = pneg %p2391_p9 }
 0x385   : > { %p2397_p0 = pnand %p2396_p13, %p2392_p10 }
 0x387   : > { %2400 = shalt.err (!%p2397_p0)
}
 0x388   : > { %2268 = dma.vmem_to_hbm [thread:$0]  (%p2509_p5), %s4165_s7, 16, %s4163_s17, %s2011_s16  }
 0x389 PF: > { %p2278_p1 = scmp.ge.s32.totalorder %s2439_s15, 2  ;;  %s2048_s27 = sand.u32 1, %s2427_s12  }
 0x38a   : > { %s2049_s29 = scalar_lea.sflag [#allocation3], %s2048_s27 }
 0x38b   : > { %p2272_p2 = pnand %p2278_p1, %p2513_p6 }
 0x38d   : > { %p2273_p3 = pneg %p2272_p2 }
 0x38f   : > { %2418 = dma.done.wait (%p2273_p3), %s2049_s29, 16  }
 0x390   : > { %2420 = vsyncadd (%p2273_p3), %s2049_s29, 4294967280  ;;  %s2057_s30 = scalar_lea.sflag [#allocation5], %s2048_s27 }
 0x391   : > { %2422 = dma.done.wait (%p2273_p3), %s2057_s30, 16  }
 0x392   : > { %2424 = vsyncadd (%p2273_p3), %s2057_s30, 4294967280  ;;  %p17_p5 = scmp.ge.s32.totalorder %s2496_s18, 4   ;;  %s4489_s12 = smov %s2431_s13 }
 0x393   : > { %s4490_s13 = smov %s2435_s14  ;;  %s4491_s14 = smov %s2507_s21 }
 0x394   : > { %s4492_s15 = smov %s2496_s18  ;;  %19 = sbr.rel (!%p17_p5) target bundleno = 5 (0x5), region = 80 }
 0x399   :  { %2061 = vsyncpa [#allocation3], 1 }
 0x39a   :  { %2063 = vsyncpa [#allocation3 + $0x1], 1 }
 0x39b   :  { %2064 = vsyncpa [#allocation5], 1 }
 0x39c   :  { %2066 = vsyncpa [#allocation5 + $0x1], 1 }

</bundles_post_ra>
